<compile_context>
chip_gen: v7x
topology: tpu7x:2x2x1
jax: 0.10.0
libtpu: 0.0.40
codegen_flags: <defaults>
</compile_context>

<pallas_src>
import functools

import jax
import jax.numpy as jnp
from jax import lax
from jax.experimental import pallas as pl
from jax.experimental.pallas import tpu as pltpu

_LANE = 128          # TPU lane width
_SUB = 16            # row (sublane) padding granularity (bf16 tile height)
_NEG_BIG = -1e30     # "minus infinity" that stays NaN-free under (x - x)
_BN_EPS = 1e-5
_NEG_SLOPE = 0.2     # PyG GATConv LeakyReLU default


def _round_up(x, m):
    return ((x + m - 1) // m) * m


# ---------------------------------------------------------------------------
# Fused GAT forward kernel (single invocation, grid=())
# ---------------------------------------------------------------------------
def _gat_forward_kernel(
    # inputs (VMEM unless noted)
    x_ref, adj_ref, pool_ref, hmask_ref,
    w0_ref, asrc0_ref, adst0_ref, b0_ref, bn0s_ref, bn0b_ref,
    w1_hbm,                       # pl.ANY: streamed in behind layer-0 compute
    asrc1_ref, adst1_ref, b1_ref, bn1s_ref, bn1b_ref,
    wc_hbm,                       # pl.ANY: streamed in behind layer-0/1 compute
    bc_ref,
    # output
    o_ref,
    # scratch
    w1_vmem, wc_vmem, dma_sem,
    *, n_heads):
    f32 = jnp.float32
    bf16 = jnp.bfloat16

    # Kick off later-stage weight DMAs so they overlap with layer-0 compute.
    cp_w1 = pltpu.make_async_copy(w1_hbm, w1_vmem, dma_sem.at[0])
    cp_wc = pltpu.make_async_copy(wc_hbm, wc_vmem, dma_sem.at[1])
    cp_w1.start()
    cp_wc.start()

    adj_bias = adj_ref[...].astype(f32)     # (R, R): 0 for edge/self-loop, -1e30 otherwise
    hmask = hmask_ref[...]                  # (8, HC_pad) f32, row h = head-h lane mask

    def gat_layer(x_bf16, w_bf16, asrc_bf16, adst_f32, bias, bn_scale, bn_shift):
        # x_bf16: (R, in_pad) bf16 -- only the real node rows.
        # Feature transform on the MXU (bf16 operands, f32 accumulate); h stays
        # bf16 since it is only ever a matmul / dot operand downstream.
        h = jnp.dot(x_bf16, w_bf16, preferred_element_type=f32).astype(bf16)   # (R, HC_pad)
        h_f32 = h.astype(f32)
        rows = h.shape[0]

        # Source scores for ALL heads with one tiny (8,HC) x (R,HC)^T matmul:
        # s_all[hd, j] = <h_j, a_src_hd>; the MXU lands j in the lane axis for free.
        s_all = lax.dot_general(asrc_bf16, h, (((1,), (1,)), ((), ())),
                                preferred_element_type=f32)                    # (8, R)

        out = jnp.zeros((rows, h.shape[1]), f32)
        for hd in range(n_heads):
            # Destination scores d[i] = <h_i, a_dst_hd>: (R,128) VPU mul + lane reduce.
            d_col = jnp.sum(h_f32 * adst_f32[hd:hd + 1, :],
                            axis=-1, keepdims=True)                            # (R, 1)
            e = d_col + s_all[hd:hd + 1, :]                                    # (R, R)
            e = jnp.where(e > 0, e, _NEG_SLOPE * e)                            # LeakyReLU(0.2)
            e = e + adj_bias                                                   # mask non-edges
            m = jnp.max(e, axis=-1, keepdims=True)
            p = jnp.exp(e - m)                                                 # masked lanes -> 0
            alpha = (p * pl.reciprocal(jnp.sum(p, axis=-1, keepdims=True),
                                       approx=True)).astype(bf16)
            agg = jnp.dot(alpha, h, preferred_element_type=f32)                # (R, HC_pad)
            out = out + agg * hmask[hd:hd + 1, :]                              # keep head-hd lanes
        out = out + bias                              # GATConv bias
        return out * bn_scale + bn_shift              # BatchNorm1d (eval, folded)

    # ---- conv0 + bn0 + ELU -------------------------------------------------
    h1 = gat_layer(x_ref[...], w0_ref[...], asrc0_ref[...], adst0_ref[...],
                   b0_ref[...], bn0s_ref[...], bn0b_ref[...])
    h1 = jnp.where(h1 > 0, h1, jnp.exp(jnp.minimum(h1, 0.0)) - 1.0)            # ELU

    # ---- conv1 + bn1 (weights arrive via the async copy started above) -----
    cp_w1.wait()
    h2 = gat_layer(h1.astype(bf16), w1_vmem[...], asrc1_ref[...], adst1_ref[...],
                   b1_ref[...], bn1s_ref[...], bn1b_ref[...])                  # (R, HC_pad)

    # ---- global mean pool with precomputed weights -------------------------
    pooled = jnp.dot(pool_ref[...], h2, preferred_element_type=f32)            # (8, HC_pad)

    # ---- flat classifier + softmax (class-lane mask pre-folded into bc) ----
    cp_wc.wait()
    logits = jnp.dot(pooled.astype(bf16), wc_vmem[...],
                     preferred_element_type=f32) + bc_ref[...]                 # (8, CLS_pad)
    m = jnp.max(logits, axis=-1, keepdims=True)
    e = jnp.exp(logits - m)
    o_ref[...] = (e / jnp.sum(e, axis=-1, keepdims=True)).astype(o_ref.dtype)


# ---------------------------------------------------------------------------
# One-time parameter preparation (hoisted out of the forward call)
# ---------------------------------------------------------------------------
def prepare_params(params, *, n_node_features, n_heads, n_channels, n_classes):
    """Pad PyTorch-convention GAT params into the head-packed, lane-dense layout."""
    C, H = n_channels, n_heads
    hc = H * C
    assert hc <= _LANE and H <= 8, "head-packed layout needs H*C <= 128 and H <= 8"
    hc_pad = _LANE
    f_pad = _round_up(max(n_node_features, 1), _LANE)
    cls_pad = _round_up(max(n_classes, 1), _LANE)
    bf16 = jnp.bfloat16

    def pad_to(mat, shape):                     # zero-pad a 2D matrix to `shape`
        out = jnp.zeros(shape, jnp.float32)
        return out.at[:mat.shape[0], :mat.shape[1]].set(mat)

    def pad_vec(v):                             # (hc,) -> (1, hc_pad)
        return jnp.zeros((1, hc_pad), jnp.float32).at[0, :hc].set(v)

    def att_rows(a):                            # (H, C): row h -> lanes [h*C, (h+1)*C)
        out = jnp.zeros((8, hc_pad), jnp.float32)
        for h in range(H):
            out = out.at[h, h * C:(h + 1) * C].set(a[h])
        return out

    def bn_fold(bn):
        scale = bn["gamma"] / jnp.sqrt(bn["var"] + _BN_EPS)
        shift = bn["beta"] - bn["mean"] * scale
        return pad_vec(scale), pad_vec(shift)

    hmask = jnp.zeros((8, hc_pad), jnp.float32)
    for h in range(H):
        hmask = hmask.at[h, h * C:(h + 1) * C].set(1.0)

    bn0s, bn0b = bn_fold(params["bn0"])
    bn1s, bn1b = bn_fold(params["bn1"])
    return {
        "w0": pad_to(params["conv0"]["w"].T, (f_pad, hc_pad)).astype(bf16),
        "asrc0": att_rows(params["conv0"]["att_src"]).astype(bf16),
        "adst0": att_rows(params["conv0"]["att_dst"]),
        "b0": pad_vec(params["conv0"]["bias"]),
        "bn0_scale": bn0s, "bn0_shift": bn0b,
        "w1": pad_to(params["conv1"]["w"].T, (hc_pad, hc_pad)).astype(bf16),
        "asrc1": att_rows(params["conv1"]["att_src"]).astype(bf16),
        "adst1": att_rows(params["conv1"]["att_dst"]),
        "b1": pad_vec(params["conv1"]["bias"]),
        "bn1_scale": bn1s, "bn1_shift": bn1b,
        "wc": pad_to(params["wc"].T, (hc_pad, cls_pad)).astype(bf16),
        # class-lane mask folded into the classifier bias (padded lanes -> -1e30)
        "bc": jnp.full((1, cls_pad), _NEG_BIG, jnp.float32)
              .at[0, :n_classes].set(params["bc"]),
        "hmask": hmask,
    }


def prepare_inputs(x, edge_index):
    """Row-restricted bf16 features, additive bf16 adjacency bias, pool weights."""
    n, f = x.shape
    n_rows = _round_up(max(n, 1), _SUB)
    f_pad = _round_up(max(f, 1), _LANE)
    x_rows = jnp.zeros((n_rows, f_pad), jnp.bfloat16).at[:n, :f].set(
        x.astype(jnp.bfloat16))
    # Additive attention mask: 0 where edge (dst row <- src col) or self loop, else -1e30.
    bias = jnp.full((n_rows, n_rows), _NEG_BIG, jnp.float32)
    bias = bias.at[edge_index[1], edge_index[0]].set(0.0)
    diag = jnp.arange(n)
    bias = bias.at[diag, diag].set(0.0)
    adj_bias = bias.astype(jnp.bfloat16)
    # Mean-pool weights: (8, n_rows) with row 0 = 1/n over the real nodes.
    pool_w = jnp.zeros((8, n_rows), jnp.float32).at[0, :n].set(1.0 / n)
    return x_rows, adj_bias, pool_w


# ---------------------------------------------------------------------------
# Forward wrapper
# ---------------------------------------------------------------------------
def gat_forward(x_rows, adj_bias, pool_w, prep, *, n_heads, n_classes):
    n_rows, f_pad = x_rows.shape
    hc_pad = prep["w0"].shape[1]
    cls_pad = prep["bc"].shape[1]

    kernel = functools.partial(_gat_forward_kernel, n_heads=n_heads)

    operands = (
        x_rows, adj_bias, pool_w, prep["hmask"],
        prep["w0"], prep["asrc0"], prep["adst0"], prep["b0"],
        prep["bn0_scale"], prep["bn0_shift"],
        prep["w1"], prep["asrc1"], prep["adst1"], prep["b1"],
        prep["bn1_scale"], prep["bn1_shift"],
        prep["wc"], prep["bc"],
    )

    vmem_spec = pl.BlockSpec(memory_space=pltpu.MemorySpace.VMEM)
    hbm_spec = pl.BlockSpec(memory_space=pl.ANY)
    in_specs = [vmem_spec] * len(operands)
    in_specs[10] = hbm_spec     # w1: streamed into VMEM inside the kernel
    in_specs[16] = hbm_spec     # wc: streamed into VMEM inside the kernel

    flops = (
        2 * n_rows * f_pad * hc_pad                      # conv0 feature transform
        + 2 * n_rows * hc_pad * hc_pad                   # conv1 feature transform
        + 2 * (2 * 8 * hc_pad * n_rows)                  # per-layer src-score matmul
        + 2 * n_heads * 2 * n_rows * n_rows * hc_pad     # per-layer per-head aggregation
        + 2 * 8 * n_rows * hc_pad                        # mean pool
        + 2 * 8 * hc_pad * cls_pad                       # classifier
    )
    transcendentals = 2 * n_heads * n_rows * n_rows + n_rows * hc_pad + 8 * cls_pad
    bytes_accessed = (sum(int(a.size) * a.dtype.itemsize for a in operands)
                      + 8 * cls_pad * 4)

    out = pl.pallas_call(
        kernel,
        out_shape=jax.ShapeDtypeStruct((8, cls_pad), jnp.float32),
        in_specs=in_specs,
        out_specs=pl.BlockSpec(memory_space=pltpu.MemorySpace.VMEM),
        scratch_shapes=[
            pltpu.VMEM((hc_pad, hc_pad), jnp.bfloat16),   # w1 landing buffer
            pltpu.VMEM((hc_pad, cls_pad), jnp.bfloat16),  # wc landing buffer
            pltpu.SemaphoreType.DMA((2,)),
        ],
        compiler_params=pltpu.CompilerParams(vmem_limit_bytes=4 * 1024 * 1024),
        cost_estimate=pl.CostEstimate(
            flops=flops, transcendentals=transcendentals,
            bytes_accessed=bytes_accessed),
    )(*operands)
    return out[0:1, :n_classes]


# ---------------------------------------------------------------------------
# Pure-JAX reference (compact, unpadded) mirroring the eval-mode GAT forward
# ---------------------------------------------------------------------------
def reference_forward(x, edge_index, params, *, n_heads, n_channels, n_classes):
    n = x.shape[0]
    C, H = n_channels, n_heads
    bf16 = jnp.bfloat16
    adj = jnp.zeros((n, n), jnp.float32).at[edge_index[1], edge_index[0]].set(1.0)
    adj = adj.at[jnp.arange(n), jnp.arange(n)].set(1.0)

    def gat_layer(xin, lp, bnp):
        h = jnp.dot(xin.astype(bf16), lp["w"].T.astype(bf16),
                    preferred_element_type=jnp.float32)          # (n, H*C)
        hh = h.reshape(n, H, C)
        s = jnp.sum(hh * lp["att_src"][None], axis=-1)           # (n, H)
        d = jnp.sum(hh * lp["att_dst"][None], axis=-1)           # (n, H)
        e = d[:, None, :] + s[None, :, :]                        # (i, j, H)
        e = jnp.where(e > 0, e, _NEG_SLOPE * e)
        e = jnp.where(adj[:, :, None] > 0, e, _NEG_BIG)
        m = jnp.max(e, axis=1, keepdims=True)
        p = jnp.exp(e - m)
        alpha = p / jnp.sum(p, axis=1, keepdims=True)
        out = jnp.einsum("ijh,jhc->ihc", alpha, hh).reshape(n, H * C)
        out = out + lp["bias"][None]
        scale = bnp["gamma"] / jnp.sqrt(bnp["var"] + _BN_EPS)
        shift = bnp["beta"] - bnp["mean"] * scale
        return out * scale[None] + shift[None]

    h1 = gat_layer(x, params["conv0"], params["bn0"])
    h1 = jnp.where(h1 > 0, h1, jnp.exp(jnp.minimum(h1, 0.0)) - 1.0)   # ELU
    h2 = gat_layer(h1, params["conv1"], params["bn1"])
    pooled = jnp.mean(h2, axis=0, keepdims=True)
    logits = jnp.dot(pooled.astype(bf16), params["wc"].T.astype(bf16),
                     preferred_element_type=jnp.float32) + params["bc"][None]
    return jax.nn.softmax(logits, axis=1)


# ---------------------------------------------------------------------------
# Deterministic initialization (PyTorch-convention shapes)
# ---------------------------------------------------------------------------
def init_params(key, *, n_node_features, n_channels, n_heads, n_classes):
    C, H = n_channels, n_heads
    hc = H * C
    ks = jax.random.split(key, 18)

    def conv(k0, k1, k2, k3, in_dim):
        return {
            "w": jax.random.normal(k0, (hc, in_dim), jnp.float32) / jnp.sqrt(in_dim),
            "att_src": jax.random.normal(k1, (H, C), jnp.float32) * 0.3,
            "att_dst": jax.random.normal(k2, (H, C), jnp.float32) * 0.3,
            "bias": jax.random.normal(k3, (hc,), jnp.float32) * 0.1,
        }

    def bn(k0, k1, k2, k3):
        return {
            "gamma": jax.random.uniform(k0, (hc,), jnp.float32, 0.5, 1.5),
            "beta": jax.random.normal(k1, (hc,), jnp.float32) * 0.1,
            "mean": jax.random.normal(k2, (hc,), jnp.float32) * 0.1,
            "var": jax.random.uniform(k3, (hc,), jnp.float32, 0.5, 1.5),
        }

    return {
        "conv0": conv(ks[0], ks[1], ks[2], ks[3], n_node_features),
        "bn0": bn(ks[4], ks[5], ks[6], ks[7]),
        "conv1": conv(ks[8], ks[9], ks[10], ks[11], hc),
        "bn1": bn(ks[12], ks[13], ks[14], ks[15]),
        "wc": jax.random.normal(ks[16], (n_classes, hc), jnp.float32) / jnp.sqrt(hc),
        "bc": jax.random.normal(ks[17], (n_classes,), jnp.float32) * 0.1,
    }


if __name__ == "__main__":
    # Small graph consistent with the module defaults:
    # 16 nodes, 8 node features, hidden channels = 10, heads = 2, 4 classes.
    N, F_IN, C, H, NCLS = 16, 8, 10, 2, 4
    N_EDGES = 48

    key = jax.random.PRNGKey(0)
    kx, ke1, ke2, kp = jax.random.split(key, 4)
    x = jax.random.normal(kx, (N, F_IN), jnp.float32)
    src = jax.random.randint(ke1, (N_EDGES,), 0, N)
    dst = jax.random.randint(ke2, (N_EDGES,), 0, N)
    edge_index = jnp.stack([src, dst])                    # (2, E), PyG convention

    params = init_params(kp, n_node_features=F_IN, n_channels=C,
                         n_heads=H, n_classes=NCLS)

    # Hoisted, one-time layout / padding work (not per forward call).
    prep = prepare_params(params, n_node_features=F_IN, n_heads=H,
                          n_channels=C, n_classes=NCLS)
    x_rows, adj_bias, pool_w = prepare_inputs(x, edge_index)

    out = gat_forward(x_rows, adj_bias, pool_w, prep, n_heads=H, n_classes=NCLS)
    out = jax.block_until_ready(out)

    ref = reference_forward(x, edge_index, params, n_heads=H,
                            n_channels=C, n_classes=NCLS)

    assert out.shape == (1, NCLS), out.shape
    assert bool(jnp.all(jnp.isfinite(out)))
    assert abs(float(jnp.sum(out)) - 1.0) < 1e-3, float(jnp.sum(out))
    assert jnp.allclose(out, ref, rtol=5e-2, atol=1e-2), (out, ref)

    print("KERNEL_OK")
</pallas_src>

<mosaic_0001>
module attributes {stable_mosaic.version = 11 : i64} {
  func.func @_gat_forward_kernel(%arg0: memref<16x128xbf16, #tpu.memory_space<vmem>>, %arg1: memref<16x16xbf16, #tpu.memory_space<vmem>>, %arg2: memref<8x16xf32, #tpu.memory_space<vmem>>, %arg3: memref<8x128xf32, #tpu.memory_space<vmem>>, %arg4: memref<128x128xbf16, #tpu.memory_space<vmem>>, %arg5: memref<8x128xbf16, #tpu.memory_space<vmem>>, %arg6: memref<8x128xf32, #tpu.memory_space<vmem>>, %arg7: memref<1x128xf32, #tpu.memory_space<vmem>>, %arg8: memref<1x128xf32, #tpu.memory_space<vmem>>, %arg9: memref<1x128xf32, #tpu.memory_space<vmem>>, %arg10: memref<128x128xbf16, #tpu.memory_space<any>>, %arg11: memref<8x128xbf16, #tpu.memory_space<vmem>>, %arg12: memref<8x128xf32, #tpu.memory_space<vmem>>, %arg13: memref<1x128xf32, #tpu.memory_space<vmem>>, %arg14: memref<1x128xf32, #tpu.memory_space<vmem>>, %arg15: memref<1x128xf32, #tpu.memory_space<vmem>>, %arg16: memref<128x128xbf16, #tpu.memory_space<any>>, %arg17: memref<1x128xf32, #tpu.memory_space<vmem>>, %arg18: memref<8x128xf32, #tpu.memory_space<vmem>>, %arg19: memref<128x128xbf16, #tpu.memory_space<vmem>>, %arg20: memref<128x128xbf16, #tpu.memory_space<vmem>>, %arg21: memref<2x!tpu.dma_semaphore, #tpu.memory_space<semaphore_mem>>) attributes {dimension_semantics = [], scalar_prefetch = 0 : i64, scratch_operands = 3 : i64, tpu.core_type = #tpu.core_type<tc>} {
    %c0_i32 = arith.constant 0 : i32
    %0 = tpu.memref_slice %arg21[%c0_i32] : memref<2x!tpu.dma_semaphore, #tpu.memory_space<semaphore_mem>> -> memref<1x!tpu.dma_semaphore, #tpu.memory_space<semaphore_mem>>
    %1 = tpu.memref_squeeze %0 : memref<1x!tpu.dma_semaphore, #tpu.memory_space<semaphore_mem>> -> memref<!tpu.dma_semaphore, #tpu.memory_space<semaphore_mem>>
    tpu.enqueue_dma source(%arg10 : memref<128x128xbf16, #tpu.memory_space<any>>) target(%arg19 : memref<128x128xbf16, #tpu.memory_space<vmem>>) target_semaphore(%1 : memref<!tpu.dma_semaphore, #tpu.memory_space<semaphore_mem>>)
    %c1_i32 = arith.constant 1 : i32
    %2 = tpu.memref_slice %arg21[%c1_i32] : memref<2x!tpu.dma_semaphore, #tpu.memory_space<semaphore_mem>> -> memref<1x!tpu.dma_semaphore, #tpu.memory_space<semaphore_mem>>
    %3 = tpu.memref_squeeze %2 : memref<1x!tpu.dma_semaphore, #tpu.memory_space<semaphore_mem>> -> memref<!tpu.dma_semaphore, #tpu.memory_space<semaphore_mem>>
    tpu.enqueue_dma source(%arg16 : memref<128x128xbf16, #tpu.memory_space<any>>) target(%arg20 : memref<128x128xbf16, #tpu.memory_space<vmem>>) target_semaphore(%3 : memref<!tpu.dma_semaphore, #tpu.memory_space<semaphore_mem>>)
    %c0 = arith.constant 0 : index
    %c0_0 = arith.constant 0 : index
    %4 = vector.load %arg1[%c0, %c0_0] : memref<16x16xbf16, #tpu.memory_space<vmem>>, vector<16x16xbf16>
    %5 = arith.extf %4 : vector<16x16xbf16> to vector<16x16xf32>
    %c0_1 = arith.constant 0 : index
    %c0_2 = arith.constant 0 : index
    %6 = vector.load %arg3[%c0_1, %c0_2] : memref<8x128xf32, #tpu.memory_space<vmem>>, vector<8x128xf32>
    %c0_3 = arith.constant 0 : index
    %c0_4 = arith.constant 0 : index
    %7 = vector.load %arg0[%c0_3, %c0_4] : memref<16x128xbf16, #tpu.memory_space<vmem>>, vector<16x128xbf16>
    %c0_5 = arith.constant 0 : index
    %c0_6 = arith.constant 0 : index
    %8 = vector.load %arg4[%c0_5, %c0_6] : memref<128x128xbf16, #tpu.memory_space<vmem>>, vector<128x128xbf16>
    %c0_7 = arith.constant 0 : index
    %c0_8 = arith.constant 0 : index
    %9 = vector.load %arg5[%c0_7, %c0_8] : memref<8x128xbf16, #tpu.memory_space<vmem>>, vector<8x128xbf16>
    %c0_9 = arith.constant 0 : index
    %c0_10 = arith.constant 0 : index
    %10 = vector.load %arg6[%c0_9, %c0_10] : memref<8x128xf32, #tpu.memory_space<vmem>>, vector<8x128xf32>
    %c0_11 = arith.constant 0 : index
    %c0_12 = arith.constant 0 : index
    %11 = vector.load %arg7[%c0_11, %c0_12] : memref<1x128xf32, #tpu.memory_space<vmem>>, vector<1x128xf32>
    %c0_13 = arith.constant 0 : index
    %c0_14 = arith.constant 0 : index
    %12 = vector.load %arg8[%c0_13, %c0_14] : memref<1x128xf32, #tpu.memory_space<vmem>>, vector<1x128xf32>
    %c0_15 = arith.constant 0 : index
    %c0_16 = arith.constant 0 : index
    %13 = vector.load %arg9[%c0_15, %c0_16] : memref<1x128xf32, #tpu.memory_space<vmem>>, vector<1x128xf32>
    %cst = arith.constant dense<0.000000e+00> : vector<16x128xf32>
    %14 = tpu.matmul %7, %8, %cst {dimension_numbers = #tpu.dot_dimension_numbers<[1], [0], [0], [1], [0, 0, 1, 1], [], []>} : vector<16x128xbf16>, vector<128x128xbf16>, vector<16x128xf32> -> vector<16x128xf32>
    %15 = arith.truncf %14 : vector<16x128xf32> to vector<16x128xbf16>
    %16 = arith.extf %15 : vector<16x128xbf16> to vector<16x128xf32>
    %cst_17 = arith.constant dense<0.000000e+00> : vector<8x16xf32>
    %17 = tpu.matmul %9, %15, %cst_17 {dimension_numbers = #tpu.dot_dimension_numbers<[1], [1], [0], [0], [0, 0, 1, 0], [], []>} : vector<8x128xbf16>, vector<16x128xbf16>, vector<8x16xf32> -> vector<8x16xf32>
    %cst_18 = arith.constant 0.000000e+00 : f32
    %18 = vector.broadcast %cst_18 : f32 to vector<16x128xf32>
    %19 = vector.extract_strided_slice %10 {offsets = [0, 0], sizes = [1, 128], strides = [1, 1]} : vector<8x128xf32> to vector<1x128xf32>
    %20 = vector.broadcast %19 : vector<1x128xf32> to vector<16x128xf32>
    %21 = arith.mulf %16, %20 : vector<16x128xf32>
    %cst_19 = arith.constant dense<0.000000e+00> : vector<16xf32>
    %22 = vector.multi_reduction <add>, %21, %cst_19 [1] : vector<16x128xf32> to vector<16xf32>
    %23 = vector.shape_cast %22 : vector<16xf32> to vector<16x1xf32>
    %24 = vector.extract_strided_slice %17 {offsets = [0, 0], sizes = [1, 16], strides = [1, 1]} : vector<8x16xf32> to vector<1x16xf32>
    %25 = vector.broadcast %23 : vector<16x1xf32> to vector<16x16xf32>
    %26 = vector.broadcast %24 : vector<1x16xf32> to vector<16x16xf32>
    %27 = arith.addf %25, %26 : vector<16x16xf32>
    %cst_20 = arith.constant 0.000000e+00 : f32
    %28 = vector.broadcast %cst_20 : f32 to vector<16x16xf32>
    %29 = arith.cmpf ogt, %27, %28 : vector<16x16xf32>
    %cst_21 = arith.constant 2.000000e-01 : f32
    %30 = vector.broadcast %cst_21 : f32 to vector<16x16xf32>
    %31 = arith.mulf %30, %27 : vector<16x16xf32>
    %32 = arith.select %29, %27, %31 : vector<16x16xi1>, vector<16x16xf32>
    %33 = arith.addf %32, %5 : vector<16x16xf32>
    %cst_22 = arith.constant dense<0xFF800000> : vector<16xf32>
    %34 = vector.multi_reduction <maximumf>, %33, %cst_22 [1] : vector<16x16xf32> to vector<16xf32>
    %35 = vector.shape_cast %34 : vector<16xf32> to vector<16x1xf32>
    %36 = vector.broadcast %35 : vector<16x1xf32> to vector<16x16xf32>
    %37 = arith.subf %33, %36 : vector<16x16xf32>
    %38 = math.exp %37 : vector<16x16xf32>
    %cst_23 = arith.constant dense<0.000000e+00> : vector<16xf32>
    %39 = vector.multi_reduction <add>, %38, %cst_23 [1] : vector<16x16xf32> to vector<16xf32>
    %40 = vector.shape_cast %39 : vector<16xf32> to vector<16x1xf32>
    %41 = tpu.reciprocal %40 {approx = true} : vector<16x1xf32> -> vector<16x1xf32>
    %42 = vector.broadcast %41 : vector<16x1xf32> to vector<16x16xf32>
    %43 = arith.mulf %38, %42 : vector<16x16xf32>
    %44 = arith.truncf %43 : vector<16x16xf32> to vector<16x16xbf16>
    %cst_24 = arith.constant dense<0.000000e+00> : vector<16x128xf32>
    %45 = tpu.matmul %44, %15, %cst_24 {dimension_numbers = #tpu.dot_dimension_numbers<[1], [0], [0], [1], [0, 0, 1, 1], [], []>} : vector<16x16xbf16>, vector<16x128xbf16>, vector<16x128xf32> -> vector<16x128xf32>
    %46 = vector.extract_strided_slice %6 {offsets = [0, 0], sizes = [1, 128], strides = [1, 1]} : vector<8x128xf32> to vector<1x128xf32>
    %47 = vector.broadcast %46 : vector<1x128xf32> to vector<16x128xf32>
    %48 = arith.mulf %45, %47 : vector<16x128xf32>
    %49 = arith.addf %18, %48 : vector<16x128xf32>
    %50 = vector.extract_strided_slice %10 {offsets = [1, 0], sizes = [1, 128], strides = [1, 1]} : vector<8x128xf32> to vector<1x128xf32>
    %51 = vector.broadcast %50 : vector<1x128xf32> to vector<16x128xf32>
    %52 = arith.mulf %16, %51 : vector<16x128xf32>
    %cst_25 = arith.constant dense<0.000000e+00> : vector<16xf32>
    %53 = vector.multi_reduction <add>, %52, %cst_25 [1] : vector<16x128xf32> to vector<16xf32>
    %54 = vector.shape_cast %53 : vector<16xf32> to vector<16x1xf32>
    %55 = vector.extract_strided_slice %17 {offsets = [1, 0], sizes = [1, 16], strides = [1, 1]} : vector<8x16xf32> to vector<1x16xf32>
    %56 = vector.broadcast %54 : vector<16x1xf32> to vector<16x16xf32>
    %57 = vector.broadcast %55 : vector<1x16xf32> to vector<16x16xf32>
    %58 = arith.addf %56, %57 : vector<16x16xf32>
    %cst_26 = arith.constant 0.000000e+00 : f32
    %59 = vector.broadcast %cst_26 : f32 to vector<16x16xf32>
    %60 = arith.cmpf ogt, %58, %59 : vector<16x16xf32>
    %cst_27 = arith.constant 2.000000e-01 : f32
    %61 = vector.broadcast %cst_27 : f32 to vector<16x16xf32>
    %62 = arith.mulf %61, %58 : vector<16x16xf32>
    %63 = arith.select %60, %58, %62 : vector<16x16xi1>, vector<16x16xf32>
    %64 = arith.addf %63, %5 : vector<16x16xf32>
    %cst_28 = arith.constant dense<0xFF800000> : vector<16xf32>
    %65 = vector.multi_reduction <maximumf>, %64, %cst_28 [1] : vector<16x16xf32> to vector<16xf32>
    %66 = vector.shape_cast %65 : vector<16xf32> to vector<16x1xf32>
    %67 = vector.broadcast %66 : vector<16x1xf32> to vector<16x16xf32>
    %68 = arith.subf %64, %67 : vector<16x16xf32>
    %69 = math.exp %68 : vector<16x16xf32>
    %cst_29 = arith.constant dense<0.000000e+00> : vector<16xf32>
    %70 = vector.multi_reduction <add>, %69, %cst_29 [1] : vector<16x16xf32> to vector<16xf32>
    %71 = vector.shape_cast %70 : vector<16xf32> to vector<16x1xf32>
    %72 = tpu.reciprocal %71 {approx = true} : vector<16x1xf32> -> vector<16x1xf32>
    %73 = vector.broadcast %72 : vector<16x1xf32> to vector<16x16xf32>
    %74 = arith.mulf %69, %73 : vector<16x16xf32>
    %75 = arith.truncf %74 : vector<16x16xf32> to vector<16x16xbf16>
    %cst_30 = arith.constant dense<0.000000e+00> : vector<16x128xf32>
    %76 = tpu.matmul %75, %15, %cst_30 {dimension_numbers = #tpu.dot_dimension_numbers<[1], [0], [0], [1], [0, 0, 1, 1], [], []>} : vector<16x16xbf16>, vector<16x128xbf16>, vector<16x128xf32> -> vector<16x128xf32>
    %77 = vector.extract_strided_slice %6 {offsets = [1, 0], sizes = [1, 128], strides = [1, 1]} : vector<8x128xf32> to vector<1x128xf32>
    %78 = vector.broadcast %77 : vector<1x128xf32> to vector<16x128xf32>
    %79 = arith.mulf %76, %78 : vector<16x128xf32>
    %80 = arith.addf %49, %79 : vector<16x128xf32>
    %81 = vector.broadcast %11 : vector<1x128xf32> to vector<16x128xf32>
    %82 = arith.addf %80, %81 : vector<16x128xf32>
    %83 = vector.broadcast %12 : vector<1x128xf32> to vector<16x128xf32>
    %84 = arith.mulf %82, %83 : vector<16x128xf32>
    %85 = vector.broadcast %13 : vector<1x128xf32> to vector<16x128xf32>
    %86 = arith.addf %84, %85 : vector<16x128xf32>
    %cst_31 = arith.constant 0.000000e+00 : f32
    %87 = vector.broadcast %cst_31 : f32 to vector<16x128xf32>
    %88 = arith.cmpf ogt, %86, %87 : vector<16x128xf32>
    %cst_32 = arith.constant 0.000000e+00 : f32
    %89 = vector.broadcast %cst_32 : f32 to vector<16x128xf32>
    %90 = arith.minimumf %86, %89 : vector<16x128xf32>
    %91 = math.exp %90 : vector<16x128xf32>
    %cst_33 = arith.constant 1.000000e+00 : f32
    %92 = vector.broadcast %cst_33 : f32 to vector<16x128xf32>
    %93 = arith.subf %91, %92 : vector<16x128xf32>
    %94 = arith.select %88, %86, %93 : vector<16x128xi1>, vector<16x128xf32>
    %c0_i32_34 = arith.constant 0 : i32
    %95 = tpu.memref_slice %arg21[%c0_i32_34] : memref<2x!tpu.dma_semaphore, #tpu.memory_space<semaphore_mem>> -> memref<1x!tpu.dma_semaphore, #tpu.memory_space<semaphore_mem>>
    %96 = tpu.memref_squeeze %95 : memref<1x!tpu.dma_semaphore, #tpu.memory_space<semaphore_mem>> -> memref<!tpu.dma_semaphore, #tpu.memory_space<semaphore_mem>>
    tpu.wait_dma2 semaphore(%96 : memref<!tpu.dma_semaphore, #tpu.memory_space<semaphore_mem>>) src(%arg10 : memref<128x128xbf16, #tpu.memory_space<any>>) dst(%arg19 : memref<128x128xbf16, #tpu.memory_space<vmem>>)
    %97 = arith.truncf %94 : vector<16x128xf32> to vector<16x128xbf16>
    %c0_35 = arith.constant 0 : index
    %c0_36 = arith.constant 0 : index
    %98 = vector.load %arg19[%c0_35, %c0_36] : memref<128x128xbf16, #tpu.memory_space<vmem>>, vector<128x128xbf16>
    %c0_37 = arith.constant 0 : index
    %c0_38 = arith.constant 0 : index
    %99 = vector.load %arg11[%c0_37, %c0_38] : memref<8x128xbf16, #tpu.memory_space<vmem>>, vector<8x128xbf16>
    %c0_39 = arith.constant 0 : index
    %c0_40 = arith.constant 0 : index
    %100 = vector.load %arg12[%c0_39, %c0_40] : memref<8x128xf32, #tpu.memory_space<vmem>>, vector<8x128xf32>
    %c0_41 = arith.constant 0 : index
    %c0_42 = arith.constant 0 : index
    %101 = vector.load %arg13[%c0_41, %c0_42] : memref<1x128xf32, #tpu.memory_space<vmem>>, vector<1x128xf32>
    %c0_43 = arith.constant 0 : index
    %c0_44 = arith.constant 0 : index
    %102 = vector.load %arg14[%c0_43, %c0_44] : memref<1x128xf32, #tpu.memory_space<vmem>>, vector<1x128xf32>
    %c0_45 = arith.constant 0 : index
    %c0_46 = arith.constant 0 : index
    %103 = vector.load %arg15[%c0_45, %c0_46] : memref<1x128xf32, #tpu.memory_space<vmem>>, vector<1x128xf32>
    %cst_47 = arith.constant dense<0.000000e+00> : vector<16x128xf32>
    %104 = tpu.matmul %97, %98, %cst_47 {dimension_numbers = #tpu.dot_dimension_numbers<[1], [0], [0], [1], [0, 0, 1, 1], [], []>} : vector<16x128xbf16>, vector<128x128xbf16>, vector<16x128xf32> -> vector<16x128xf32>
    %105 = arith.truncf %104 : vector<16x128xf32> to vector<16x128xbf16>
    %106 = arith.extf %105 : vector<16x128xbf16> to vector<16x128xf32>
    %cst_48 = arith.constant dense<0.000000e+00> : vector<8x16xf32>
    %107 = tpu.matmul %99, %105, %cst_48 {dimension_numbers = #tpu.dot_dimension_numbers<[1], [1], [0], [0], [0, 0, 1, 0], [], []>} : vector<8x128xbf16>, vector<16x128xbf16>, vector<8x16xf32> -> vector<8x16xf32>
    %cst_49 = arith.constant 0.000000e+00 : f32
    %108 = vector.broadcast %cst_49 : f32 to vector<16x128xf32>
    %109 = vector.extract_strided_slice %100 {offsets = [0, 0], sizes = [1, 128], strides = [1, 1]} : vector<8x128xf32> to vector<1x128xf32>
    %110 = vector.broadcast %109 : vector<1x128xf32> to vector<16x128xf32>
    %111 = arith.mulf %106, %110 : vector<16x128xf32>
    %cst_50 = arith.constant dense<0.000000e+00> : vector<16xf32>
    %112 = vector.multi_reduction <add>, %111, %cst_50 [1] : vector<16x128xf32> to vector<16xf32>
    %113 = vector.shape_cast %112 : vector<16xf32> to vector<16x1xf32>
    %114 = vector.extract_strided_slice %107 {offsets = [0, 0], sizes = [1, 16], strides = [1, 1]} : vector<8x16xf32> to vector<1x16xf32>
    %115 = vector.broadcast %113 : vector<16x1xf32> to vector<16x16xf32>
    %116 = vector.broadcast %114 : vector<1x16xf32> to vector<16x16xf32>
    %117 = arith.addf %115, %116 : vector<16x16xf32>
    %cst_51 = arith.constant 0.000000e+00 : f32
    %118 = vector.broadcast %cst_51 : f32 to vector<16x16xf32>
    %119 = arith.cmpf ogt, %117, %118 : vector<16x16xf32>
    %cst_52 = arith.constant 2.000000e-01 : f32
    %120 = vector.broadcast %cst_52 : f32 to vector<16x16xf32>
    %121 = arith.mulf %120, %117 : vector<16x16xf32>
    %122 = arith.select %119, %117, %121 : vector<16x16xi1>, vector<16x16xf32>
    %123 = arith.addf %122, %5 : vector<16x16xf32>
    %cst_53 = arith.constant dense<0xFF800000> : vector<16xf32>
    %124 = vector.multi_reduction <maximumf>, %123, %cst_53 [1] : vector<16x16xf32> to vector<16xf32>
    %125 = vector.shape_cast %124 : vector<16xf32> to vector<16x1xf32>
    %126 = vector.broadcast %125 : vector<16x1xf32> to vector<16x16xf32>
    %127 = arith.subf %123, %126 : vector<16x16xf32>
    %128 = math.exp %127 : vector<16x16xf32>
    %cst_54 = arith.constant dense<0.000000e+00> : vector<16xf32>
    %129 = vector.multi_reduction <add>, %128, %cst_54 [1] : vector<16x16xf32> to vector<16xf32>
    %130 = vector.shape_cast %129 : vector<16xf32> to vector<16x1xf32>
    %131 = tpu.reciprocal %130 {approx = true} : vector<16x1xf32> -> vector<16x1xf32>
    %132 = vector.broadcast %131 : vector<16x1xf32> to vector<16x16xf32>
    %133 = arith.mulf %128, %132 : vector<16x16xf32>
    %134 = arith.truncf %133 : vector<16x16xf32> to vector<16x16xbf16>
    %cst_55 = arith.constant dense<0.000000e+00> : vector<16x128xf32>
    %135 = tpu.matmul %134, %105, %cst_55 {dimension_numbers = #tpu.dot_dimension_numbers<[1], [0], [0], [1], [0, 0, 1, 1], [], []>} : vector<16x16xbf16>, vector<16x128xbf16>, vector<16x128xf32> -> vector<16x128xf32>
    %136 = vector.extract_strided_slice %6 {offsets = [0, 0], sizes = [1, 128], strides = [1, 1]} : vector<8x128xf32> to vector<1x128xf32>
    %137 = vector.broadcast %136 : vector<1x128xf32> to vector<16x128xf32>
    %138 = arith.mulf %135, %137 : vector<16x128xf32>
    %139 = arith.addf %108, %138 : vector<16x128xf32>
    %140 = vector.extract_strided_slice %100 {offsets = [1, 0], sizes = [1, 128], strides = [1, 1]} : vector<8x128xf32> to vector<1x128xf32>
    %141 = vector.broadcast %140 : vector<1x128xf32> to vector<16x128xf32>
    %142 = arith.mulf %106, %141 : vector<16x128xf32>
    %cst_56 = arith.constant dense<0.000000e+00> : vector<16xf32>
    %143 = vector.multi_reduction <add>, %142, %cst_56 [1] : vector<16x128xf32> to vector<16xf32>
    %144 = vector.shape_cast %143 : vector<16xf32> to vector<16x1xf32>
    %145 = vector.extract_strided_slice %107 {offsets = [1, 0], sizes = [1, 16], strides = [1, 1]} : vector<8x16xf32> to vector<1x16xf32>
    %146 = vector.broadcast %144 : vector<16x1xf32> to vector<16x16xf32>
    %147 = vector.broadcast %145 : vector<1x16xf32> to vector<16x16xf32>
    %148 = arith.addf %146, %147 : vector<16x16xf32>
    %cst_57 = arith.constant 0.000000e+00 : f32
    %149 = vector.broadcast %cst_57 : f32 to vector<16x16xf32>
    %150 = arith.cmpf ogt, %148, %149 : vector<16x16xf32>
    %cst_58 = arith.constant 2.000000e-01 : f32
    %151 = vector.broadcast %cst_58 : f32 to vector<16x16xf32>
    %152 = arith.mulf %151, %148 : vector<16x16xf32>
    %153 = arith.select %150, %148, %152 : vector<16x16xi1>, vector<16x16xf32>
    %154 = arith.addf %153, %5 : vector<16x16xf32>
    %cst_59 = arith.constant dense<0xFF800000> : vector<16xf32>
    %155 = vector.multi_reduction <maximumf>, %154, %cst_59 [1] : vector<16x16xf32> to vector<16xf32>
    %156 = vector.shape_cast %155 : vector<16xf32> to vector<16x1xf32>
    %157 = vector.broadcast %156 : vector<16x1xf32> to vector<16x16xf32>
    %158 = arith.subf %154, %157 : vector<16x16xf32>
    %159 = math.exp %158 : vector<16x16xf32>
    %cst_60 = arith.constant dense<0.000000e+00> : vector<16xf32>
    %160 = vector.multi_reduction <add>, %159, %cst_60 [1] : vector<16x16xf32> to vector<16xf32>
    %161 = vector.shape_cast %160 : vector<16xf32> to vector<16x1xf32>
    %162 = tpu.reciprocal %161 {approx = true} : vector<16x1xf32> -> vector<16x1xf32>
    %163 = vector.broadcast %162 : vector<16x1xf32> to vector<16x16xf32>
    %164 = arith.mulf %159, %163 : vector<16x16xf32>
    %165 = arith.truncf %164 : vector<16x16xf32> to vector<16x16xbf16>
    %cst_61 = arith.constant dense<0.000000e+00> : vector<16x128xf32>
    %166 = tpu.matmul %165, %105, %cst_61 {dimension_numbers = #tpu.dot_dimension_numbers<[1], [0], [0], [1], [0, 0, 1, 1], [], []>} : vector<16x16xbf16>, vector<16x128xbf16>, vector<16x128xf32> -> vector<16x128xf32>
    %167 = vector.extract_strided_slice %6 {offsets = [1, 0], sizes = [1, 128], strides = [1, 1]} : vector<8x128xf32> to vector<1x128xf32>
    %168 = vector.broadcast %167 : vector<1x128xf32> to vector<16x128xf32>
    %169 = arith.mulf %166, %168 : vector<16x128xf32>
    %170 = arith.addf %139, %169 : vector<16x128xf32>
    %171 = vector.broadcast %101 : vector<1x128xf32> to vector<16x128xf32>
    %172 = arith.addf %170, %171 : vector<16x128xf32>
    %173 = vector.broadcast %102 : vector<1x128xf32> to vector<16x128xf32>
    %174 = arith.mulf %172, %173 : vector<16x128xf32>
    %175 = vector.broadcast %103 : vector<1x128xf32> to vector<16x128xf32>
    %176 = arith.addf %174, %175 : vector<16x128xf32>
    %c0_62 = arith.constant 0 : index
    %c0_63 = arith.constant 0 : index
    %177 = vector.load %arg2[%c0_62, %c0_63] : memref<8x16xf32, #tpu.memory_space<vmem>>, vector<8x16xf32>
    %cst_64 = arith.constant dense<0.000000e+00> : vector<8x128xf32>
    %178 = tpu.matmul %177, %176, %cst_64 {dimension_numbers = #tpu.dot_dimension_numbers<[1], [0], [0], [1], [0, 0, 1, 1], [], []>} : vector<8x16xf32>, vector<16x128xf32>, vector<8x128xf32> -> vector<8x128xf32>
    %c1_i32_65 = arith.constant 1 : i32
    %179 = tpu.memref_slice %arg21[%c1_i32_65] : memref<2x!tpu.dma_semaphore, #tpu.memory_space<semaphore_mem>> -> memref<1x!tpu.dma_semaphore, #tpu.memory_space<semaphore_mem>>
    %180 = tpu.memref_squeeze %179 : memref<1x!tpu.dma_semaphore, #tpu.memory_space<semaphore_mem>> -> memref<!tpu.dma_semaphore, #tpu.memory_space<semaphore_mem>>
    tpu.wait_dma2 semaphore(%180 : memref<!tpu.dma_semaphore, #tpu.memory_space<semaphore_mem>>) src(%arg16 : memref<128x128xbf16, #tpu.memory_space<any>>) dst(%arg20 : memref<128x128xbf16, #tpu.memory_space<vmem>>)
    %181 = arith.truncf %178 : vector<8x128xf32> to vector<8x128xbf16>
    %c0_66 = arith.constant 0 : index
    %c0_67 = arith.constant 0 : index
    %182 = vector.load %arg20[%c0_66, %c0_67] : memref<128x128xbf16, #tpu.memory_space<vmem>>, vector<128x128xbf16>
    %cst_68 = arith.constant dense<0.000000e+00> : vector<8x128xf32>
    %183 = tpu.matmul %181, %182, %cst_68 {dimension_numbers = #tpu.dot_dimension_numbers<[1], [0], [0], [1], [0, 0, 1, 1], [], []>} : vector<8x128xbf16>, vector<128x128xbf16>, vector<8x128xf32> -> vector<8x128xf32>
    %c0_69 = arith.constant 0 : index
    %c0_70 = arith.constant 0 : index
    %184 = vector.load %arg17[%c0_69, %c0_70] : memref<1x128xf32, #tpu.memory_space<vmem>>, vector<1x128xf32>
    %185 = vector.broadcast %184 : vector<1x128xf32> to vector<8x128xf32>
    %186 = arith.addf %183, %185 : vector<8x128xf32>
    %cst_71 = arith.constant dense<0xFF800000> : vector<8xf32>
    %187 = vector.multi_reduction <maximumf>, %186, %cst_71 [1] : vector<8x128xf32> to vector<8xf32>
    %188 = vector.shape_cast %187 : vector<8xf32> to vector<8x1xf32>
    %189 = vector.broadcast %188 : vector<8x1xf32> to vector<8x128xf32>
    %190 = arith.subf %186, %189 : vector<8x128xf32>
    %191 = math.exp %190 : vector<8x128xf32>
    %cst_72 = arith.constant dense<0.000000e+00> : vector<8xf32>
    %192 = vector.multi_reduction <add>, %191, %cst_72 [1] : vector<8x128xf32> to vector<8xf32>
    %193 = vector.shape_cast %192 : vector<8xf32> to vector<8x1xf32>
    %194 = vector.broadcast %193 : vector<8x1xf32> to vector<8x128xf32>
    %195 = arith.divf %191, %194 : vector<8x128xf32>
    %c0_73 = arith.constant 0 : index
    %c0_74 = arith.constant 0 : index
    %196 = vector.load %arg18[%c0_73, %c0_74] : memref<8x128xf32, #tpu.memory_space<vmem>>, vector<8x128xf32>
    tpu.vector_store %arg18[%c0_73, %c0_74], %195 {strides = array<i32>} : memref<8x128xf32, #tpu.memory_space<vmem>>, vector<8x128xf32>,
    return
  }
}

</mosaic_0001>

<bundles_post_ra>
// kernel: tpu_custom_call.1
= control target key start
LH: loop header
LB: loop body
LE: loop exit
PB: predicated region body
PF: predicated region fallthrough
CT: control target
= control target key end

     0   :  { %s1836_s0 = inlined_call_operand.hbm [shape: bf16[16,128], index: 0, kind: input, shape index: {}]   ;;  %s1837_s1 = inlined_call_operand.hbm [shape: bf16[16,16], index: 1, kind: input, shape index: {}]   ;;  %s1838_s2 = inlined_call_operand.hbm [shape: f32[8,16], index: 2, kind: input, shape index: {}]   ;;  %s1839_s3 = inlined_call_operand.vmem [shape: f32[8,128], index: 3, kind: input, shape index: {}]   ;;  %s1840_s4 = inlined_call_operand.hbm [shape: bf16[128,128], index: 4, kind: input, shape index: {}]   ;;  %s1841_s5 = inlined_call_operand.hbm [shape: bf16[8,128], index: 5, kind: input, shape index: {}]   ;;  %s1842_s6 = inlined_call_operand.vmem [shape: f32[8,128], index: 6, kind: input, shape index: {}]   ;;  %s1843_s7 = inlined_call_operand.vmem [shape: f32[1,128], index: 7, kind: input, shape index: {}]   ;;  %s1844_s8 = inlined_call_operand.vmem [shape: f32[1,128], index: 8, kind: input, shape index: {}]   ;;  %s1845_s9 = inlined_call_operand.vmem [shape: f32[1,128], index: 9, kind: input, shape index: {}]   ;;  %s1846_s10 = inlined_call_operand.hbm [shape: bf16[128,128], index: 10, kind: input, shape index: {}]   ;;  %s1847_s11 = inlined_call_operand.vmem [shape: bf16[8,128], index: 11, kind: input, shape index: {}]   ;;  %s1848_s12 = inlined_call_operand.vmem [shape: f32[8,128], index: 12, kind: input, shape index: {}]   ;;  %s1849_s13 = inlined_call_operand.vmem [shape: f32[1,128], index: 13, kind: input, shape index: {}]   ;;  %s1850_s14 = inlined_call_operand.vmem [shape: f32[1,128], index: 14, kind: input, shape index: {}]   ;;  %s1851_s15 = inlined_call_operand.vmem [shape: f32[1,128], index: 15, kind: input, shape index: {}]   ;;  %s1852_s16 = inlined_call_operand.hbm [shape: bf16[128,128], index: 16, kind: input, shape index: {}]   ;;  %s1853_s17 = inlined_call_operand.vmem [shape: f32[1,128], index: 17, kind: input, shape index: {}]   ;;  %s1854_s18 = inlined_call_operand.hbm [shape: f32[8,128], index: 18, kind: output, shape index: {}]  }
   0x1   :  { %1859 = sst [smem:[#allocation27_spill]] %s1836_s0 }
   0x2   :  { %1860 = sst [smem:[#allocation28_spill]] %s1837_s1 }
   0x3   :  { %1861 = sst [smem:[#allocation29_spill]] %s1838_s2 }
   0x4   :  { %1862 = sst [smem:[#allocation30_spill]] %s1853_s17 }
   0x5   :  { %1863 = sst [smem:[#allocation31_spill]] %s1854_s18 }
   0x6   :  { %23 = vsyncpa [#allocation6], 0 }
   0x7   :  { %24 = vsyncpa [#allocation9], 0 }
   0x8   :  { %25 = vsyncpa [#allocation12], 0 }
   0x9   :  { %26 = vsyncpa [#allocation7], 0  ;;  %s1460_s27 = smov [#allocation8]   ;;  %s1461_s29 = smov [#allocation11]  }
   0xa   :  { %s44_s28 = sshll.u32 %s1460_s27, 4  ;;  %s68_s30 = sshll.u32 %s1461_s29, 4  ;;  %s45_s28 = int_to_ptr.vmem [resolvable:$true] %s44_s28  ;;  %s1568_s30 = int_to_ptr.vmem [resolvable:$true] %s68_s30 }
   0xb   :  { %s1864_s1 = sld [smem:[#allocation28_spill]] }
  0x11   :  { %s1272_s20 = scalar_lea.hbm %s1864_s1, 128 }
  0x12   :  { %p1273_p0 = scmp.ne.s32.totalorder %s1864_s1, %s1272_s20  ;;  %p1276_p1 = scmp.lt.u32.totalorder %s1272_s20, %s1864_s1 }
  0x14   :  { %p1278_p2 = pnand %p1276_p1, %p1273_p0 }
  0x16   :  { %1281 = shalt.err (!%p1278_p2)
}
  0x17   :  { %s1282_s24 = scalar_lea.vmem %s45_s28, 128  ;;  %p1287_p4 = scmp.lt.s32.totalorder %s45_s28, %s45_s28 }
  0x18   :  { %p1283_p3 = scmp.ne.s32.totalorder %s45_s28, %s1282_s24  ;;  %p1288_p5 = scmp.lt.s32.totalorder %s1282_s24, %s1282_s24 }
  0x1a   :  { %p1289_p6 = por %p1288_p5, %p1287_p4 }
  0x1c   :  { %p1290_p7 = pnand %p1289_p6, %p1283_p3 }
  0x1e   :  { %1293 = shalt.err (!%p1290_p7)
}
  0x1f   :  { %s1462_s25 = smov 64   ;;  %s1463_s26 = smov 4  }
  0x20   :  { %50 = dma.hbm_to_vmem [thread:$0]  %s1864_s1, 128, %s45_s28, [#allocation9], %s1462_s25, %s1462_s25, %s1463_s26  }
  0x21   :  { %s1294_s20 = scalar_lea.hbm %s1840_s4, 1024 }
  0x22   :  { %p1295_p8 = scmp.ne.s32.totalorder %s1840_s4, %s1294_s20  ;;  %p1298_p9 = scmp.lt.u32.totalorder %s1294_s20, %s1840_s4 }
  0x24   :  { %p1300_p10 = pnand %p1298_p9, %p1295_p8 }
  0x26   :  { %1303 = shalt.err (!%p1300_p10)
}
  0x27   :  { %s1304_s24 = scalar_lea.vmem %s1568_s30, 1024  ;;  %p1309_p12 = scmp.lt.s32.totalorder %s1568_s30, %s1568_s30 }
  0x28   :  { %p1305_p11 = scmp.ne.s32.totalorder %s1568_s30, %s1304_s24  ;;  %p1310_p13 = scmp.lt.s32.totalorder %s1304_s24, %s1304_s24 }
  0x2a   :  { %p1311_p0 = por %p1310_p13, %p1309_p12 }
  0x2c   :  { %p1312_p1 = pnand %p1311_p0, %p1305_p11 }
  0x2e   :  { %1315 = shalt.err (!%p1312_p1)
}
  0x2f   :  { %74 = dma.hbm_to_vmem [thread:$0]  %s1840_s4, 1024, %s1568_s30, [#allocation12], %s1462_s25, %s1462_s25, %s1463_s26  }
  0x30   :  { %s1464_s27 = smov [#allocation5]   ;;  %s1465_s0 = smov [#allocation10]  }
  0x31   :  { %s32_s29 = sshll.u32 %s1464_s27, 4  ;;  %s57_s19 = sshll.u32 %s1465_s0, 4  ;;  %s33_s29 = int_to_ptr.vmem [resolvable:$true] %s32_s29  ;;  %s58_s19 = int_to_ptr.vmem [resolvable:$true] %s57_s19 }
  0x32   :  { %s1865_s22 = sld [smem:[#allocation27_spill]] }
  0x38   :  { %s1316_s2 = scalar_lea.hbm %s1865_s22, 128 }
  0x39   :  { %p1317_p2 = scmp.ne.s32.totalorder %s1865_s22, %s1316_s2  ;;  %p1320_p3 = scmp.lt.u32.totalorder %s1316_s2, %s1865_s22 }
  0x3b   :  { %p1322_p4 = pnand %p1320_p3, %p1317_p2 }
  0x3d   :  { %1325 = shalt.err (!%p1322_p4)
}
  0x3e   :  { %s1326_s4 = scalar_lea.vmem %s33_s29, 128  ;;  %p1331_p6 = scmp.lt.s32.totalorder %s33_s29, %s33_s29 }
  0x3f   :  { %p1327_p5 = scmp.ne.s32.totalorder %s33_s29, %s1326_s4  ;;  %p1332_p7 = scmp.lt.s32.totalorder %s1326_s4, %s1326_s4 }
  0x41   :  { %p1333_p8 = por %p1332_p7, %p1331_p6 }
  0x43   :  { %p1334_p9 = pnand %p1333_p8, %p1327_p5 }
  0x45   :  { %1337 = shalt.err (!%p1334_p9)
}
  0x46   :  { %38 = dma.hbm_to_vmem [thread:$0]  %s1865_s22, 128, %s33_s29, [#allocation6], %s1462_s25, %s1462_s25, %s1463_s26  }
  0x47   :  { %s1866_s17 = sld [smem:[#allocation29_spill]] }
  0x4d   :  { %s1338_s18 = scalar_lea.hbm %s1866_s17, 128 }
  0x4e   :  { %p1339_p10 = scmp.ne.s32.totalorder %s1866_s17, %s1338_s18  ;;  %p1342_p11 = scmp.lt.u32.totalorder %s1338_s18, %s1866_s17 }
  0x50   :  { %p1344_p12 = pnand %p1342_p11, %p1339_p10 }
  0x52   :  { %1347 = shalt.err (!%p1344_p12)
}
  0x53   :  { %s1348_s23 = scalar_lea.vmem %s58_s19, 128  ;;  %p1353_p0 = scmp.lt.s32.totalorder %s58_s19, %s58_s19 }
  0x54   :  { %p1349_p13 = scmp.ne.s32.totalorder %s58_s19, %s1348_s23  ;;  %p1354_p1 = scmp.lt.s32.totalorder %s1348_s23, %s1348_s23 }
  0x56   :  { %p1355_p2 = por %p1354_p1, %p1353_p0 }
  0x58   :  { %p1356_p3 = pnand %p1355_p2, %p1349_p13 }
  0x5a   :  { %1359 = shalt.err (!%p1356_p3)
}
  0x5b   :  { %60 = dma.hbm_to_vmem [thread:$0]  %s1866_s17, 128, %s58_s19, [#allocation9]  }
  0x5c   :  { %s1466_s29 = smov [#allocation13]   ;;  %s1360_s30 = scalar_lea.hbm %s1841_s5, 64 }
  0x5d   :  { %s81_s22 = sshll.u32 %s1466_s29, 4  ;;  %p1361_p4 = scmp.ne.s32.totalorder %s1841_s5, %s1360_s30  ;;  %s82_s22 = int_to_ptr.vmem [resolvable:$true] %s81_s22 }
  0x5e   :  { %p1364_p5 = scmp.lt.u32.totalorder %s1360_s30, %s1841_s5 }
  0x60   :  { %p1366_p6 = pnand %p1364_p5, %p1361_p4 }
  0x62   :  { %1369 = shalt.err (!%p1366_p6)
}
  0x63   :  { %s1370_s0 = scalar_lea.vmem %s82_s22, 64  ;;  %p1375_p8 = scmp.lt.s32.totalorder %s82_s22, %s82_s22 }
  0x64   :  { %p1371_p7 = scmp.ne.s32.totalorder %s82_s22, %s1370_s0  ;;  %p1376_p9 = scmp.lt.s32.totalorder %s1370_s0, %s1370_s0 }
  0x66   :  { %p1377_p10 = por %p1376_p9, %p1375_p8 }
  0x68   :  { %p1378_p11 = pnand %p1377_p10, %p1371_p7 }
  0x6a   :  { %1381 = shalt.err (!%p1378_p11)
}
  0x6b   :  { %84 = dma.hbm_to_vmem [thread:$0]  %s1841_s5, 64, %s82_s22, [#allocation12]  }
  0x6c   :  { %1448 = dma.done.wait [#allocation6], 128  }
  0x6d   :  { %1449 = vsyncadd [#allocation6], 4294967168 }
  0x6e   :  { %1450 = dma.done.wait [#allocation9], 256  }
  0x6f   :  { %1451 = vsyncadd [#allocation9], 4294967040 }
  0x70   :  { %1452 = dma.done.wait [#allocation12], 1088  }
  0x71   :  { %1453 = vsyncadd [#allocation12], 4294966208  ;;  %v1467_v0 = vmov 0.0   ;;  %vm1468_vm0 = vmmov 0   ;;  %v1223_v1 = vld [vmem:[#allocation11] sm:$0xff]   ;;  %v1224_v2 = vld [vmem:[#allocation11 + $0x8] sm:$0xff]   ;;  %v310_v10 = vlaneseq }
  0x72   :  { %1104 = vmatprep.subr.bf16.mxu0 %v1467_v0  ;;  %1120 = vmatprep.mubr.msk.bf16.mxu0 %vm1468_vm0, %v1467_v0  ;;  %v1225_v3 = vld [vmem:[#allocation11 + $0x10] sm:$0xff]   ;;  %v1226_v4 = vld [vmem:[#allocation11 + $0x18] sm:$0xff]   ;;  %v1227_v5 = vld [vmem:[#allocation11 + $0x20] sm:$0xff]   ;;  %vm334_vm5 = vcmask 130048   ;;  %s1470_s2 = smov [#allocation3]   ;;  %s1382_s29 = scalar_lea.hbm %s1846_s10, 1024 }
  0x73   :  { %1130 = vmatprep.subr.bf16.mxu1 %v1467_v0  ;;  %1132 = vmatprep.mubr.msk.bf16.mxu1 %vm1468_vm0, %v1467_v0  ;;  %v1228_v6 = vld [vmem:[#allocation11 + $0x28] sm:$0xff]   ;;  %v1229_v7 = vld [vmem:[#allocation11 + $0x30] sm:$0xff]   ;;  %v1230_v8 = vld [vmem:[#allocation11 + $0x38] sm:$0xff]   ;;  %v311_v11 = vshrl.u32 %v310_v10, 7  ;;  %s140_s23 = sshll.u32 %s1470_s2, 4  ;;  %p1383_p12 = scmp.ne.s32.totalorder %s1846_s10, %s1382_s29  ;;  %s141_s23 = int_to_ptr.vmem [resolvable:$true] %s140_s23 }
  0x74   :  { %1105 = vmatpush3.bf16.msra.mxu0 %v1223_v1  ;;  %v1231_v9 = vld [vmem:[#allocation5] sm:$0xff]   ;;  %v167_v26 = vld [vmem:[#allocation13] sm:$0xf]  ;;  %v1059_v36 = vld [vmem:[#allocation8] sm:$0xff]   ;;  %p1386_p13 = scmp.lt.u32.totalorder %s1382_s29, %s1846_s10 }
  0x75   :  { %1106 = vmatprep.subr.bf16.mxu0 %v1467_v0  ;;  %v1660_v12 = vsub.s32 1, %v311_v11  ;;  %v1662_v13 = vsub.s32 0, %v311_v11  ;;  %v168_v15 = vld [vmem:[%s1842_s6] sm:$0xff]  ;;  %v1678_v44 = vunpack.c.h.bf16 %v1059_v36  ;;  %v1680_v45 = vunpack.c.l.bf16 %v1059_v36  ;;  %s1469_s6 = smov [#allocation2]  }
  0x76   :  { %s128_s21 = sshll.u32 %s1469_s6, 4  ;;  %p1388_p0 = pnand %p1386_p13, %p1383_p12  ;;  %s129_s21 = int_to_ptr.vmem [resolvable:$true] %s128_s21 }
  0x77   :  { %v413_v20 = vrot.slane %v168_v15, %v1660_v12  ;;  %v313_v21 = vrot.slane %v168_v15, %v1662_v13 }
  0x78   :  { %1107 = vmatpush3.bf16.msra.mxu0 %v1224_v2 }
  0x79   :  { %1108 = vmatprep.subr.bf16.mxu0 %v1467_v0 }
  0x7c   :  { %1109 = vmatpush3.bf16.msra.mxu0 %v1225_v3 }
  0x7d   :  { %1110 = vmatprep.subr.bf16.mxu0 %v1467_v0 }
  0x80   :  { %1111 = vmatpush3.bf16.msra.mxu0 %v1226_v4 }
  0x81   :  { %1112 = vmatprep.subr.bf16.mxu0 %v1467_v0 }
  0x84   :  { %1113 = vmatpush3.bf16.msra.mxu0 %v1227_v5 }
  0x85   :  { %1114 = vmatprep.subr.bf16.mxu0 %v1467_v0 }
  0x88   :  { %1115 = vmatpush3.bf16.msra.mxu0 %v1228_v6 }
  0x89   :  { %1116 = vmatprep.subr.bf16.mxu0 %v1467_v0 }
  0x8c   :  { %1117 = vmatpush3.bf16.msra.mxu0 %v1229_v7 }
  0x8d   :  { %1118 = vmatprep.subr.bf16.mxu0 %v1467_v0 }
  0x90   :  { %1119 = vmatpush3.bf16.msra.mxu0 %v1230_v8 }
  0x91   :  { %1124 = vmatprep.subr.bf16.mxu0 %v1467_v0 }
  0x93   :  { %1121 = vmatmul.mubr.bf16.vlgmr.msra.gmra.mrb[0].mxu0 %v1231_v9 }
  0x94   :  { %1126 = vmatprep.mubr.msk.bf16.mxu0 %vm1468_vm0, %v1467_v0 }
 0x166   :  { %v260_v14 = vpop.f32.mrb[0].mxu0 }
 0x167   :  { %v1122_v16 = vpop.f32.mrb[1].mxu0 }
 0x168   :  { %v263_v17 = vpop.f32.mrb[2].mxu0 }
 0x169   :  { %v1667_v18 = vpack.c.bf16 %v263_v17, %v260_v14  ;;  %v1123_v19 = vpop.f32.mrb[3].mxu0 }
 0x16b   :  { %1125 = vmatpush3.bf16.xpose.msra.mxu0 %v1667_v18  ;;  %1131 = vmatpush3.bf16.msra.mxu1 %v1667_v18  ;;  %v268_v22 = vunpack.c.l.bf16 %v1667_v18  ;;  %v269_v25 = vunpack.c.h.bf16 %v1667_v18 }
 0x16c   :  { %1136 = vmatprep.subr.bf16.mxu1 %v1467_v0 }
 0x16d   :  { %v414_v23 = vmul.f32 %v413_v20, %v268_v22  ;;  %v314_v24 = vmul.f32 %v313_v21, %v268_v22  ;;  %v415_v27 = vmul.f32 %v413_v20, %v269_v25  ;;  %v315_v28 = vmul.f32 %v313_v21, %v269_v25 }
 0x16f   :  { %416 = vadd.xlane.f32.xlu1 %v414_v23  ;;  %316 = vadd.xlane.f32.xlu0 %v314_v24 }
 0x172   :  { %1127 = vmatmul.mubr.bf16.vlgmr.msra.gmra.mrb[4].mxu0 %v167_v26 }
 0x173   :  { %418 = vadd.xlane.f32.xlu1 %v415_v27  ;;  %318 = vadd.xlane.f32.xlu0 %v315_v28 }
 0x1fc   :  { %v417_v29 = vpop.xlane.xlu1 %416  ;;  %v317_v30 = vpop.xlane.xlu0 %316 }
 0x200   :  { %v419_v32 = vpop.xlane.xlu1 %418  ;;  %v319_v37 = vpop.xlane.xlu0 %318 }
 0x245   :  { %v304_v31 = vpop.f32.mrb[4].mxu0 }
 0x246   :  { %v323_v33 = vrot.slane %v304_v31, %v1662_v13  ;;  %v423_v34 = vrot.slane %v304_v31, %v1660_v12  ;;  %v1128_v35 = vpop.f32.mrb[5].mxu0 }
 0x247   :  { %v307_v38 = vpop.f32.mrb[6].mxu0 }
 0x248   :  { %v324_v39 = vadd.f32 %v323_v33, %v317_v30  ;;  %v325_v40 = vadd.f32 %v323_v33, %v319_v37  ;;  %v424_v41 = vadd.f32 %v423_v34, %v417_v29  ;;  %v425_v42 = vadd.f32 %v423_v34, %v419_v32  ;;  %v1129_v43 = vpop.f32.mrb[7].mxu0 }
 0x24a   :  { %vm327_vm1 = vcmp.gt.f32.partialorder %v325_v40, 0.0  ;;  %v329_v46 = vmul.f32 0.2, %v325_v40  ;;  %vm326_vm2 = vcmp.gt.f32.partialorder %v324_v39, 0.0  ;;  %v328_v47 = vmul.f32 0.2, %v324_v39 }
 0x24b   :  { %vm427_vm3 = vcmp.gt.f32.partialorder %v425_v42, 0.0  ;;  %v429_v48 = vmul.f32 0.2, %v425_v42  ;;  %vm426_vm4 = vcmp.gt.f32.partialorder %v424_v41, 0.0  ;;  %v428_v49 = vmul.f32 0.2, %v424_v41 }
 0x24c   :  { %v331_v50 = vsel %vm327_vm1, %v325_v40, %v329_v46  ;;  %v330_v51 = vsel %vm326_vm2, %v324_v39, %v328_v47 }
 0x24d   :  { %v333_v52 = vadd.f32 %v1678_v44, %v331_v50  ;;  %v332_v53 = vadd.f32 %v1680_v45, %v330_v51  ;;  %v431_v54 = vsel %vm427_vm3, %v425_v42, %v429_v48  ;;  %v430_v55 = vsel %vm426_vm4, %v424_v41, %v428_v49 }
 0x24e   :  { %v433_v58 = vadd.f32 %v1678_v44, %v431_v54  ;;  %v432_v59 = vadd.f32 %v1680_v45, %v430_v55 }
 0x24f   :  { %v338_v56 = vsel %vm334_vm5, %v333_v52, -inf  ;;  %v335_v57 = vsel %vm334_vm5, %v332_v53, -inf }
 0x250   :  { %339 = vmax.xlane.f32.xlu1 %v338_v56  ;;  %336 = vmax.xlane.f32.xlu0 %v335_v57  ;;  %v437_v60 = vsel %vm334_vm5, %v433_v58, -inf  ;;  %v434_v61 = vsel %vm334_vm5, %v432_v59, -inf }
 0x254   :  { %438 = vmax.xlane.f32.xlu1 %v437_v60  ;;  %435 = vmax.xlane.f32.xlu0 %v434_v61 }
 0x2dd   :  { %v340_v62 = vpop.xlane.xlu1 %339  ;;  %v337_v63 = vpop.xlane.xlu0 %336 }
 0x2de   :  { %v342_v1 = vsub.f32 %v333_v52, %v340_v62  ;;  %v341_v2 = vsub.f32 %v332_v53, %v337_v63 }
 0x2e0   :  { %v345_v3 = vmul.f32 1.442695, %v342_v1  ;;  %v343_v4 = vmul.f32 1.442695, %v341_v2 }
 0x2e1   :  { %v439_v5 = vpop.xlane.xlu1 %438  ;;  %v436_v6 = vpop.xlane.xlu0 %435 }
 0x2e2   :  { %1232 = vpow2.f32 %v345_v3  ;;  %v441_v7 = vsub.f32 %v433_v58, %v439_v5  ;;  %v440_v8 = vsub.f32 %v432_v59, %v436_v6 }
 0x2e3   :  { %1234 = vpow2.f32 %v343_v4 }
 0x2e4   :  { %v444_v9 = vmul.f32 1.442695, %v441_v7  ;;  %v442_v10 = vmul.f32 1.442695, %v440_v8 }
 0x2e6   :  { %1236 = vpow2.f32 %v444_v9 }
 0x2e7   :  { %1238 = vpow2.f32 %v442_v10 }
 0x2ec   :  { %v1233_v11 = vpop.eup %1232 }
 0x2ed   :  { %v1235_v14 = vpop.eup %1234  ;;  %v350_v15 = vsel %vm334_vm5, %v1233_v11, 0.0 }
 0x2ee   :  { %351 = vadd.xlane.f32.xlu1 %v350_v15  ;;  %v347_v16 = vsel %vm334_vm5, %v1235_v14, 0.0 }
 0x2ef   :  { %348 = vadd.xlane.f32.xlu0 %v347_v16 }
 0x2f0   :  { %v1237_v17 = vpop.eup %1236 }
 0x2f1   :  { %v1239_v19 = vpop.eup %1238  ;;  %v449_v20 = vsel %vm334_vm5, %v1237_v17, 0.0 }
 0x2f2   :  { %450 = vadd.xlane.f32.xlu1 %v449_v20  ;;  %v446_v21 = vsel %vm334_vm5, %v1239_v19, 0.0 }
 0x2f3   :  { %447 = vadd.xlane.f32.xlu0 %v446_v21 }
 0x37b   :  { %v352_v22 = vpop.xlane.xlu1 %351 }
 0x37c   :  { %1240 = vrcp.f32 %v352_v22  ;;  %v349_v23 = vpop.xlane.xlu0 %348 }
 0x37d   :  { %1242 = vrcp.f32 %v349_v23 }
 0x37f   :  { %v451_v24 = vpop.xlane.xlu1 %450 }
 0x380   :  { %1244 = vrcp.f32 %v451_v24  ;;  %v448_v25 = vpop.xlane.xlu0 %447 }
 0x381   :  { %1246 = vrcp.f32 %v448_v25 }
 0x386   :  { %v1241_v26 = vpop.eup %1240 }
 0x387   :  { %v1243_v27 = vpop.eup %1242  ;;  %v356_v28 = vmul.f32 %v1241_v26, %v1233_v11 }
 0x388   :  { %v355_v29 = vmul.f32 %v1243_v27, %v1235_v14 }
 0x38a   :  { %v1245_v30 = vpop.eup %1244  ;;  %v357_v31 = vpack.c.bf16 %v356_v28, %v355_v29 }
 0x38b   :  { %v1247_v32 = vpop.eup %1246  ;;  %v455_v33 = vmul.f32 %v1245_v30, %v1237_v17 }
 0x38c   :  { %1133 = vmatmul.mubr.msk.bf16.vlgmr.msra.gmra.mrb[0].mxu1 %vm334_vm5, %v357_v31  ;;  %v454_v34 = vmul.f32 %v1247_v32, %v1239_v19 }
 0x38d   :  { %1137 = vmatpush3.bf16.msra.mxu1 %v1667_v18  ;;  %1138 = vmatprep.mubr.msk.bf16.mxu1 %vm1468_vm0, %v1467_v0 }
 0x38e   :  { %v456_v35 = vpack.c.bf16 %v455_v33, %v454_v34 }
 0x394   :  { %1139 = vmatmul.mubr.msk.bf16.vlgmr.msra.gmra.mrb[4].mxu1 %vm334_vm5, %v456_v35 }
 0x395   :  { %1391 = shalt.err (!%p1388_p0)  }
 0x396   :  { %s1392_s28 = scalar_lea.vmem %s129_s21, 1024  ;;  %p1397_p2 = scmp.lt.s32.totalorder %s129_s21, %s129_s21 }
 0x397   :  { %p1393_p1 = scmp.ne.s32.totalorder %s129_s21, %s1392_s28  ;;  %p1398_p3 = scmp.lt.s32.totalorder %s1392_s28, %s1392_s28 }
 0x399   :  { %p1399_p4 = por %p1398_p3, %p1397_p2 }
 0x39b   :  { %p1400_p5 = pnand %p1399_p4, %p1393_p1 }
 0x39d   :  { %1403 = shalt.err (!%p1400_p5)  }
 0x39e   :  { %131 = dma.hbm_to_vmem [thread:$0]  %s1846_s10, 1024, %s129_s21, [#allocation4] }
 0x39f   :  { %s1404_s19 = scalar_lea.hbm %s1852_s16, 1024 }
 0x3a0   :  { %p1405_p6 = scmp.ne.s32.totalorder %s1852_s16, %s1404_s19  ;;  %p1408_p7 = scmp.lt.u32.totalorder %s1404_s19, %s1852_s16 }
 0x3a2   :  { %p1410_p8 = pnand %p1408_p7, %p1405_p6 }
 0x3a4   :  { %1413 = shalt.err (!%p1410_p8)  }
 0x3a5   :  { %s1414_s2 = scalar_lea.vmem %s141_s23, 1024  ;;  %p1419_p10 = scmp.lt.s32.totalorder %s141_s23, %s141_s23 }
 0x3a6   :  { %p1415_p9 = scmp.ne.s32.totalorder %s141_s23, %s1414_s2  ;;  %p1420_p11 = scmp.lt.s32.totalorder %s1414_s2, %s1414_s2 }
 0x3a8   :  { %p1421_p12 = por %p1420_p11, %p1419_p10 }
 0x3aa   :  { %p1422_p13 = pnand %p1421_p12, %p1415_p9 }
 0x3ac   :  { %1425 = shalt.err (!%p1422_p13)  }
 0x3ad   :  { %143 = dma.hbm_to_vmem [thread:$0]  %s1852_s16, 1024, %s141_s23, [#allocation4 + $0x1]  ;;  %v148_v37 = vld [vmem:[%s1839_s3] sm:$0xff] }
 0x3ae   :  { %v1727_v40 = vrot.slane %v148_v37, %v1662_v13  ;;  %v1730_v41 = vrot.slane %v148_v37, %v1660_v12  ;;  %v1044_v48 = vld [vmem:[%s1843_s7] ss:$0 sm:$0xff] }
 0x3af   :  { %v1045_v54 = vld [vmem:[%s1844_s8] ss:$0 sm:$0xff] }
 0x3b0   :  { %v1046_v57 = vld [vmem:[%s1845_s9] ss:$0 sm:$0xff] }
 0x45f   :  { %v395_v18 = vpop.f32.mrb[0].mxu1 }
 0x460   :  { %v1134_v36 = vpop.f32.mrb[1].mxu1  ;;  %v406_v43 = vmul.f32 %v1727_v40, %v395_v18 }
 0x461   :  { %v398_v38 = vpop.f32.mrb[2].mxu1 }
 0x462   :  { %v1135_v39 = vpop.f32.mrb[3].mxu1  ;;  %v407_v50 = vmul.f32 %v1727_v40, %v398_v38 }
 0x467   :  { %v494_v42 = vpop.f32.mrb[4].mxu1 }
 0x468   :  { %v505_v46 = vmul.f32 %v1730_v41, %v494_v42  ;;  %v1140_v47 = vpop.f32.mrb[5].mxu1 }
 0x469   :  { %v497_v49 = vpop.f32.mrb[6].mxu1 }
 0x46a   :  { %v507_v51 = vadd.f32 %v505_v46, %v406_v43  ;;  %v506_v52 = vmul.f32 %v1730_v41, %v497_v49  ;;  %v1141_v53 = vpop.f32.mrb[7].mxu1 }
 0x46c   :  { %v515_v55 = vadd.f32 %v1044_v48, %v507_v51  ;;  %v508_v56 = vadd.f32 %v506_v52, %v407_v50 }
 0x46e   :  { %v523_v58 = vmul.f32 %v1045_v54, %v515_v55  ;;  %v516_v59 = vadd.f32 %v1044_v48, %v508_v56 }
 0x470   :  { %v531_v60 = vadd.f32 %v1046_v57, %v523_v58  ;;  %v524_v61 = vmul.f32 %v1045_v54, %v516_v59 }
 0x472   :  { %v535_v62 = vmin.f32 %v531_v60, 0.0  ;;  %v532_v63 = vadd.f32 %v1046_v57, %v524_v61  ;;  %vm533_vm6 = vcmp.gt.f32.partialorder %v531_v60, 0.0 }
 0x474   :  { %v537_v1 = vmul.f32 1.442695, %v535_v62  ;;  %v536_v2 = vmin.f32 %v532_v63, 0.0  ;;  %vm534_vm7 = vcmp.gt.f32.partialorder %v532_v63, 0.0 }
 0x476   :  { %1248 = vpow2.f32 %v537_v1  ;;  %v539_v3 = vmul.f32 1.442695, %v536_v2 }
 0x478   :  { %1250 = vpow2.f32 %v539_v3 }
 0x480   :  { %v1249_v4 = vpop.eup %1248 }
 0x481   :  { %v1047_v5 = vadd.f32 -1.0, %v1249_v4 }
 0x482   :  { %v1251_v6 = vpop.eup %1250 }
 0x483   :  { %v543_v7 = vsel %vm533_vm6, %v531_v60, %v1047_v5  ;;  %v1048_v8 = vadd.f32 -1.0, %v1251_v6 }
 0x485   :  { %v544_v9 = vsel %vm534_vm7, %v532_v63, %v1048_v8 }
 0x486   :  { %1454 = dma.done.wait [#allocation4], 1024 }
 0x487   :  { %1455 = vsyncadd [#allocation4], 4294966272  ;;  %1142 = vmatprep.subr.bf16.mxu1 %v1467_v0  ;;  %1158 = vmatprep.mubr.msk.bf16.mxu1 %vm1468_vm0, %v1467_v0  ;;  %v550_v10 = vld [vmem:[#allocation2] sm:$0xff]  ;;  %v551_v11 = vld [vmem:[#allocation2 + $0x8] sm:$0xff]  ;;  %v549_v21 = vpack.c.bf16 %v544_v9, %v543_v7 }
 0x488   :  { %1162 = vmatprep.subr.bf16.mxu0 %v1467_v0  ;;  %1164 = vmatprep.mubr.msk.bf16.mxu0 %vm1468_vm0, %v1467_v0  ;;  %v552_v14 = vld [vmem:[#allocation2 + $0x10] sm:$0xff]  ;;  %v553_v15 = vld [vmem:[#allocation2 + $0x18] sm:$0xff]  ;;  %v554_v16 = vld [vmem:[#allocation2 + $0x20] sm:$0xff] }
 0x489   :  { %1143 = vmatpush3.bf16.msra.mxu1 %v550_v10  ;;  %v555_v17 = vld [vmem:[#allocation2 + $0x28] sm:$0xff]  ;;  %v556_v19 = vld [vmem:[#allocation2 + $0x30] sm:$0xff]  ;;  %v557_v20 = vld [vmem:[#allocation2 + $0x38] sm:$0xff] }
 0x48a   :  { %1144 = vmatprep.subr.bf16.mxu1 %v1467_v0  ;;  %v559_v23 = vld [vmem:[%s1848_s12] sm:$0xff] }
 0x48b   :  { %v745_v28 = vrot.slane %v559_v23, %v1660_v12  ;;  %v650_v29 = vrot.slane %v559_v23, %v1662_v13  ;;  %v558_v34 = vld [vmem:[%s1847_s11] sm:$0xf] }
 0x48d   :  { %1145 = vmatpush3.bf16.msra.mxu1 %v551_v11 }
 0x48e   :  { %1146 = vmatprep.subr.bf16.mxu1 %v1467_v0 }
 0x491   :  { %1147 = vmatpush3.bf16.msra.mxu1 %v552_v14 }
 0x492   :  { %1148 = vmatprep.subr.bf16.mxu1 %v1467_v0 }
 0x495   :  { %1149 = vmatpush3.bf16.msra.mxu1 %v553_v15 }
 0x496   :  { %1150 = vmatprep.subr.bf16.mxu1 %v1467_v0 }
 0x499   :  { %1151 = vmatpush3.bf16.msra.mxu1 %v554_v16 }
 0x49a   :  { %1152 = vmatprep.subr.bf16.mxu1 %v1467_v0 }
 0x49d   :  { %1153 = vmatpush3.bf16.msra.mxu1 %v555_v17 }
 0x49e   :  { %1154 = vmatprep.subr.bf16.mxu1 %v1467_v0 }
 0x4a1   :  { %1155 = vmatpush3.bf16.msra.mxu1 %v556_v19 }
 0x4a2   :  { %1156 = vmatprep.subr.bf16.mxu1 %v1467_v0 }
 0x4a5   :  { %1157 = vmatpush3.bf16.msra.mxu1 %v557_v20 }
 0x4a8   :  { %1159 = vmatmul.mubr.bf16.vlgmr.msra.gmra.mrb[8].mxu1 %v549_v21 }
 0x57b   :  { %v597_v22 = vpop.f32.mrb[8].mxu1 }
 0x57c   :  { %v1160_v24 = vpop.f32.mrb[9].mxu1 }
 0x57d   :  { %v600_v25 = vpop.f32.mrb[10].mxu1 }
 0x57e   :  { %v1761_v26 = vpack.c.bf16 %v600_v25, %v597_v22  ;;  %v1161_v27 = vpop.f32.mrb[11].mxu1 }
 0x580   :  { %1163 = vmatpush3.bf16.xpose.msra.mxu0 %v1761_v26  ;;  %v605_v30 = vunpack.c.l.bf16 %v1761_v26  ;;  %v606_v33 = vunpack.c.h.bf16 %v1761_v26 }
 0x581   :  { %1168 = vmatprep.subr.bf16.mxu0 %v1467_v0 }
 0x582   :  { %v746_v31 = vmul.f32 %v745_v28, %v605_v30  ;;  %v651_v32 = vmul.f32 %v650_v29, %v605_v30  ;;  %v747_v35 = vmul.f32 %v745_v28, %v606_v33  ;;  %v652_v18 = vmul.f32 %v650_v29, %v606_v33 }
 0x584   :  { %748 = vadd.xlane.f32.xlu1 %v746_v31  ;;  %653 = vadd.xlane.f32.xlu0 %v651_v32 }
 0x587   :  { %1165 = vmatmul.mubr.bf16.vlgmr.msra.gmra.mrb[8].mxu0 %v558_v34 }
 0x588   :  { %1169 = vmatpush3.bf16.msra.mxu0 %v1761_v26  ;;  %750 = vadd.xlane.f32.xlu1 %v747_v35 }
 0x589   :  { %655 = vadd.xlane.f32.xlu0 %v652_v18  ;;  %1170 = vmatprep.mubr.msk.bf16.mxu0 %vm1468_vm0, %v1467_v0 }
 0x58a   :  { %1174 = vmatprep.subr.bf16.mxu0 %v1467_v0 }
 0x611   :  { %v749_v36 = vpop.xlane.xlu1 %748  ;;  %v654_v37 = vpop.xlane.xlu0 %653 }
 0x615   :  { %v751_v39 = vpop.xlane.xlu1 %750 }
 0x616   :  { %v656_v47 = vpop.xlane.xlu0 %655 }
 0x65a   :  { %v641_v38 = vpop.f32.mrb[8].mxu0 }
 0x65b   :  { %v660_v42 = vrot.slane %v641_v38, %v1662_v13  ;;  %v755_v43 = vrot.slane %v641_v38, %v1660_v12  ;;  %v1166_v46 = vpop.f32.mrb[9].mxu0 }
 0x65c   :  { %v644_v48 = vpop.f32.mrb[10].mxu0 }
 0x65d   :  { %v661_v49 = vadd.f32 %v660_v42, %v654_v37  ;;  %v662_v50 = vadd.f32 %v660_v42, %v656_v47  ;;  %v756_v51 = vadd.f32 %v755_v43, %v749_v36  ;;  %v757_v52 = vadd.f32 %v755_v43, %v751_v39  ;;  %v1167_v53 = vpop.f32.mrb[11].mxu0 }
 0x65e   :  { %v1471_v42 = vmov 0.0|0.0  }
 0x65f   :  { %vm663_vm8 = vcmp.gt.f32.partialorder %v661_v49, 0.0  ;;  %v665_v54 = vmul.f32 0.2, %v661_v49  ;;  %vm664_vm9 = vcmp.gt.f32.partialorder %v662_v50, 0.0  ;;  %v666_v55 = vmul.f32 0.2, %v662_v50 }
 0x660   :  { %vm758_vm10 = vcmp.gt.f32.partialorder %v756_v51, 0.0  ;;  %v760_v56 = vmul.f32 0.2, %v756_v51  ;;  %vm759_vm11 = vcmp.gt.f32.partialorder %v757_v52, 0.0  ;;  %v761_v57 = vmul.f32 0.2, %v757_v52 }
 0x661   :  { %v667_v58 = vsel %vm663_vm8, %v661_v49, %v665_v54  ;;  %v668_v13 = vsel %vm664_vm9, %v662_v50, %v666_v55 }
 0x662   :  { %v669_v12 = vadd.f32 %v1680_v45, %v667_v58  ;;  %v670_v59 = vadd.f32 %v1678_v44, %v668_v13  ;;  %v762_v60 = vsel %vm758_vm10, %v756_v51, %v760_v56  ;;  %v763_v61 = vsel %vm759_vm11, %v757_v52, %v761_v57  ;;  %v1051_v52 = vld [vmem:[%s1849_s13] ss:$0 sm:$0xff] }
 0x663   :  { %v764_v1 = vadd.f32 %v1680_v45, %v762_v60  ;;  %v765_v2 = vadd.f32 %v1678_v44, %v763_v61  ;;  %v1052_v58 = vld [vmem:[%s1850_s14] ss:$0 sm:$0xff] }
 0x664   :  { %v671_v62 = vsel %vm334_vm5, %v669_v12, -inf  ;;  %v674_v63 = vsel %vm334_vm5, %v670_v59, -inf  ;;  %v1053_v61 = vld [vmem:[%s1851_s15] ss:$0 sm:$0xff] }
 0x665   :  { %672 = vmax.xlane.f32.xlu0 %v671_v62  ;;  %675 = vmax.xlane.f32.xlu1 %v674_v63  ;;  %v766_v3 = vsel %vm334_vm5, %v764_v1, -inf  ;;  %v769_v4 = vsel %vm334_vm5, %v765_v2, -inf }
 0x669   :  { %767 = vmax.xlane.f32.xlu0 %v766_v3  ;;  %770 = vmax.xlane.f32.xlu1 %v769_v4 }
 0x6f2   :  { %v676_v5 = vpop.xlane.xlu1 %675  ;;  %v673_v6 = vpop.xlane.xlu0 %672 }
 0x6f3   :  { %v678_v7 = vsub.f32 %v670_v59, %v676_v5  ;;  %v677_v8 = vsub.f32 %v669_v12, %v673_v6 }
 0x6f5   :  { %v681_v9 = vmul.f32 1.442695, %v678_v7  ;;  %v679_v10 = vmul.f32 1.442695, %v677_v8 }
 0x6f6   :  { %v771_v11 = vpop.xlane.xlu1 %770  ;;  %v768_v14 = vpop.xlane.xlu0 %767 }
 0x6f7   :  { %1252 = vpow2.f32 %v681_v9  ;;  %v773_v45 = vsub.f32 %v765_v2, %v771_v11  ;;  %v772_v15 = vsub.f32 %v764_v1, %v768_v14  ;;  %v861_v2 = vld [vmem:[#allocation10] sm:$0xff] }
 0x6f8   :  { %1254 = vpow2.f32 %v679_v10 }
 0x6f9   :  { %v776_v44 = vmul.f32 1.442695, %v773_v45  ;;  %v774_v16 = vmul.f32 1.442695, %v772_v15 }
 0x6fb   :  { %1256 = vpow2.f32 %v776_v44 }
 0x6fc   :  { %1258 = vpow2.f32 %v774_v16 }
 0x701   :  { %v1253_v17 = vpop.eup %1252 }
 0x702   :  { %v1255_v19 = vpop.eup %1254  ;;  %v686_v20 = vsel %vm334_vm5, %v1253_v17, 0.0 }
 0x703   :  { %687 = vadd.xlane.f32.xlu1 %v686_v20  ;;  %v683_v21 = vsel %vm334_vm5, %v1255_v19, 0.0 }
 0x704   :  { %684 = vadd.xlane.f32.xlu0 %v683_v21 }
 0x705   :  { %v1257_v22 = vpop.eup %1256 }
 0x706   :  { %v1259_v23 = vpop.eup %1258  ;;  %v781_v24 = vsel %vm334_vm5, %v1257_v22, 0.0 }
 0x707   :  { %782 = vadd.xlane.f32.xlu1 %v781_v24  ;;  %v778_v25 = vsel %vm334_vm5, %v1259_v23, 0.0 }
 0x708   :  { %779 = vadd.xlane.f32.xlu0 %v778_v25 }
 0x790   :  { %v688_v27 = vpop.xlane.xlu1 %687 }
 0x791   :  { %1260 = vrcp.f32 %v688_v27  ;;  %v685_v28 = vpop.xlane.xlu0 %684 }
 0x792   :  { %1262 = vrcp.f32 %v685_v28 }
 0x794   :  { %v783_v29 = vpop.xlane.xlu1 %782 }
 0x795   :  { %1264 = vrcp.f32 %v783_v29  ;;  %v780_v30 = vpop.xlane.xlu0 %779 }
 0x796   :  { %1266 = vrcp.f32 %v780_v30 }
 0x79b   :  { %v1261_v31 = vpop.eup %1260 }
 0x79c   :  { %v1263_v32 = vpop.eup %1262  ;;  %v692_v33 = vmul.f32 %v1261_v31, %v1253_v17 }
 0x79d   :  { %v691_v34 = vmul.f32 %v1263_v32, %v1255_v19 }
 0x79f   :  { %v1265_v35 = vpop.eup %1264  ;;  %v693_v18 = vpack.c.bf16 %v692_v33, %v691_v34 }
 0x7a0   :  { %v1267_v36 = vpop.eup %1266  ;;  %v787_v38 = vmul.f32 %v1265_v35, %v1257_v22 }
 0x7a1   :  { %1171 = vmatmul.mubr.msk.bf16.vlgmr.msra.gmra.mrb[12].mxu0 %vm334_vm5, %v693_v18  ;;  %v786_v37 = vmul.f32 %v1267_v36, %v1259_v23 }
 0x7a2   :  { %1175 = vmatpush3.bf16.msra.mxu0 %v1761_v26  ;;  %1176 = vmatprep.mubr.msk.bf16.mxu0 %vm1468_vm0, %v1467_v0 }
 0x7a3   :  { %v788_v39 = vpack.c.bf16 %v787_v38, %v786_v37  ;;  %1207 = vmatprep.subr.bf16.mxu0 %v1471_v42 }
 0x7a9   :  { %1177 = vmatmul.mubr.msk.bf16.vlgmr.msra.gmra.mrb[16].mxu0 %vm334_vm5, %v788_v39 }
 0x7aa   :  { %1184 = vmatprep.mubr.msk.f32.mxu0 %vm1468_vm0, %v1467_v0 }
 0x874   :  { %v731_v43 = vpop.f32.mrb[12].mxu0 }
 0x875   :  { %v1172_v46 = vpop.f32.mrb[13].mxu0  ;;  %v738_v26 = vmul.f32 %v731_v43, %v1727_v40 }
 0x876   :  { %v734_v47 = vpop.f32.mrb[14].mxu0 }
 0x877   :  { %v1173_v48 = vpop.f32.mrb[15].mxu0  ;;  %v739_v54 = vmul.f32 %v734_v47, %v1727_v40 }
 0x87c   :  { %v826_v49 = vpop.f32.mrb[16].mxu0 }
 0x87d   :  { %v833_v50 = vmul.f32 %v826_v49, %v1730_v41  ;;  %v1178_v51 = vpop.f32.mrb[17].mxu0 }
 0x87e   :  { %v829_v53 = vpop.f32.mrb[18].mxu0 }
 0x87f   :  { %v835_v55 = vadd.f32 %v833_v50, %v738_v26  ;;  %v834_v56 = vmul.f32 %v829_v53, %v1730_v41  ;;  %v1179_v57 = vpop.f32.mrb[19].mxu0 }
 0x881   :  { %v843_v13 = vadd.f32 %v1051_v52, %v835_v55  ;;  %v836_v12 = vadd.f32 %v834_v56, %v739_v54 }
 0x883   :  { %v851_v59 = vmul.f32 %v1052_v58, %v843_v13  ;;  %v844_v60 = vadd.f32 %v1051_v52, %v836_v12 }
 0x885   :  { %v852_v62 = vmul.f32 %v1052_v58, %v844_v60  ;;  %v859_v63 = vadd.f32 %v1053_v61, %v851_v59 }
 0x887   :  { %v860_v1 = vadd.f32 %v1053_v61, %v852_v62 }
 0x889   :  { %v1208_v40 = vpack.c.bf16 %v860_v1, %v859_v63 }
 0x88b   :  { %1209 = vmatpush3.bf16.msra.mxu0 %v1208_v40 }
 0x88e   :  { %1185 = vmatmul.mubr.msk.f32.vlgmr.msra.gmra.mrb[20].mxu0 %vm334_vm5, %v861_v2 }
 0x961   :  { %v931_v41 = vpop.f32.mrb[20].mxu0 }
 0x962   :  { %v1186_v3 = vpop.f32.mrb[21].mxu0 }
 0x963   :  { %1456 = dma.done.wait [#allocation4 + $0x1], 1024 }
 0x964   :  { %1457 = vsyncadd [#allocation4 + $0x1], 4294966272  ;;  %1187 = vmatprep.subr.bf16.mxu1 %v1467_v0  ;;  %1203 = vmatprep.mubr.msk.bf16.mxu1 %vm1468_vm0, %v1467_v0  ;;  %v938_v4 = vld [vmem:[#allocation3] sm:$0xff]  ;;  %v939_v5 = vld [vmem:[#allocation3 + $0x8] sm:$0xff]  ;;  %v937_v14 = vpack.c.bf16 %v931_v41, %v931_v41  ;;  %s1867_s15 = sld [smem:[#allocation30_spill]]  ;;  %s1472_s18 = smov [#allocation14]  }
 0x965   :  { %1188 = vmatpush3.bf16.msra.mxu1 %v938_v4  ;;  %v940_v6 = vld [vmem:[#allocation3 + $0x10] sm:$0xff]  ;;  %v941_v7 = vld [vmem:[#allocation3 + $0x18] sm:$0xff]  ;;  %v942_v8 = vld [vmem:[#allocation3 + $0x20] sm:$0xff]  ;;  %s1009_s0 = sshll.u32 %s1472_s18, 4  ;;  %s1010_s0 = int_to_ptr.vmem [resolvable:$true] %s1009_s0 }
 0x966   :  { %1189 = vmatprep.subr.bf16.mxu1 %v1467_v0  ;;  %v943_v9 = vld [vmem:[#allocation3 + $0x28] sm:$0xff]  ;;  %v944_v10 = vld [vmem:[#allocation3 + $0x30] sm:$0xff]  ;;  %v945_v11 = vld [vmem:[#allocation3 + $0x38] sm:$0xff]  ;;  %s1426_s19 = scalar_lea.vmem %s1010_s0, 128  ;;  %p1431_p1 = scmp.lt.s32.totalorder %s1010_s0, %s1010_s0 }
 0x967   :  { %p1427_p0 = scmp.ne.s32.totalorder %s1010_s0, %s1426_s19  ;;  %p1432_p2 = scmp.lt.s32.totalorder %s1426_s19, %s1426_s19 }
 0x969   :  { %1190 = vmatpush3.bf16.msra.mxu1 %v939_v5  ;;  %p1433_p3 = por %p1432_p2, %p1431_p1 }
 0x96a   :  { %1191 = vmatprep.subr.bf16.mxu1 %v1467_v0  ;;  %v1055_v45 = vld [vmem:[%s1867_s15] ss:$0 sm:$0xff] }
 0x96b   :  { %p1434_p4 = pnand %p1433_p3, %p1427_p0 }
 0x96d   :  { %1192 = vmatpush3.bf16.msra.mxu1 %v940_v6 }
 0x96e   :  { %1193 = vmatprep.subr.bf16.mxu1 %v1467_v0 }
 0x971   :  { %1194 = vmatpush3.bf16.msra.mxu1 %v941_v7 }
 0x972   :  { %1195 = vmatprep.subr.bf16.mxu1 %v1467_v0 }
 0x975   :  { %1196 = vmatpush3.bf16.msra.mxu1 %v942_v8 }
 0x976   :  { %1197 = vmatprep.subr.bf16.mxu1 %v1467_v0 }
 0x979   :  { %1198 = vmatpush3.bf16.msra.mxu1 %v943_v9 }
 0x97a   :  { %1199 = vmatprep.subr.bf16.mxu1 %v1467_v0 }
 0x97d   :  { %1200 = vmatpush3.bf16.msra.mxu1 %v944_v10 }
 0x97e   :  { %1201 = vmatprep.subr.bf16.mxu1 %v1467_v0 }
 0x981   :  { %1202 = vmatpush3.bf16.msra.mxu1 %v945_v11 }
 0x984   :  { %1204 = vmatmul.mubr.bf16.vlgmr.msra.gmra.mrb[12].mxu1 %v937_v14 }
 0xa57   :  { %v987_v15 = vpop.f32.mrb[12].mxu1 }
 0xa58   :  { %v988_v44 = vadd.f32 %v1055_v45, %v987_v15  ;;  %v1205_v16 = vpop.f32.mrb[13].mxu1 }
 0xa59   :  { %v990_v17 = vpop.f32.mrb[14].mxu1 }
 0xa5a   :  { %993 = vmax.xlane.f32.xlu0 %v988_v44  ;;  %v1206_v19 = vpop.f32.mrb[15].mxu1 }
 0xae7   :  { %v994_v20 = vpop.xlane.xlu0 %993 }
 0xae8   :  { %v995_v21 = vsub.f32 %v988_v44, %v994_v20 }
 0xaea   :  { %v996_v22 = vmul.f32 1.442695, %v995_v21 }
 0xaec   :  { %1268 = vpow2.f32 %v996_v22 }
 0xaf6   :  { %v1269_v23 = vpop.eup %1268 }
 0xaf7   :  { %998 = vadd.xlane.f32.xlu0 %v1269_v23 }
 0xb84   :  { %v999_v0 = vpop.xlane.xlu0 %998 }
 0xb85   :  { %1270 = vrcp.f32 %v999_v0 }
 0xb8f   :  { %v1271_v24 = vpop.eup %1270 }
 0xb90   :  { %v1001_v25 = vmul.f32 %v1271_v24, %v1269_v23 }
 0xb92   :  { %1002 = vst [vmem:[#allocation14] sm:$0xff] %v1001_v25 }
 0xb93   :  { %1437 = shalt.err (!%p1434_p4)
}
 0xb94   :  { %s1868_s20 = sld [smem:[#allocation31_spill]] }
 0xb9a   :  { %s1438_s6 = scalar_lea.hbm %s1868_s20, 128 }
 0xb9b   :  { %p1439_p5 = scmp.ne.s32.totalorder %s1868_s20, %s1438_s6  ;;  %p1442_p6 = scmp.lt.u32.totalorder %s1438_s6, %s1868_s20 }
 0xb9d   :  { %p1444_p7 = pnand %p1442_p6, %p1439_p5 }
 0xb9f   :  { %1447 = shalt.err (!%p1444_p7)
}
 0xba0   :  { %1012 = dma.vmem_to_hbm [thread:$0]  %s1010_s0, 128, %s1868_s20, [#allocation7]  }
 0xba1   :  { %1458 = dma.done.wait [#allocation7], 128  }
 0xba2   :  { %1459 = vsyncadd [#allocation7], 4294967168 }
 0xba3   :  { %1016 = vsyncpa [#allocation6], 1 }
 0xba4   :  { %1017 = vsyncpa [#allocation9], 1 }
 0xba5   :  { %1018 = vsyncpa [#allocation12], 1 }
 0xba6   :  { %1019 = vsyncpa [#allocation7], 1 }
 0xba7   :  { %1020 = vsyncmov [#allocation4] }
 0xbaa   :  { %s1021_s23 = vpop.sfrf %1020 }
 0xbab   :  { %p1056_p8 = scmp.ne.s32.totalorder %s1021_s23, 0 }
 0xbad   :  { %1025 = shalt.err (%p1056_p8)  }
 0xbae   :  { %1027 = vsyncmov [#allocation4 + $0x1] }
 0xbb1   :  { %s1028_s3 = vpop.sfrf %1027 }
 0xbb2   :  { %p1057_p9 = scmp.ne.s32.totalorder %s1028_s3, 0 }
 0xbb4   :  { %1032 = shalt.err (%p1057_p9)  }

</bundles_post_ra>
